<compile_context>
chip_gen: v5e
topology: v5e:2x2
jax: 0.10.0
libtpu: 0.0.40
codegen_flags: <defaults>
</compile_context>

<pallas_src>
import functools
import math

import jax
import jax.numpy as jnp
from jax.experimental import pallas as pl
from jax.experimental.pallas import tpu as pltpu

EPS = 1e-6
NEG_BIAS = -1e30            # additive key-padding bias; must stay f32
LOG2E = 1.4426950408889634  # softmax runs in the exp2 domain


def _vmem_limit_bytes():
    # Derive the scoped-VMEM budget from the chip generation instead of
    # hardcoding one number (64 MiB physical on v7x, 128 MiB on v5e/v6e).
    try:
        cap = int(pltpu.get_tpu_info().vmem_capacity_bytes)
        return int(min(cap * 3 // 4, 112 * 1024 * 1024))
    except Exception:
        return 64 * 1024 * 1024


VMEM_LIMIT = _vmem_limit_bytes()


def _pick_tile(n, candidates=(256, 128, 64, 32, 16, 8)):
    """Largest candidate tile that evenly divides n, else the full extent."""
    for t in candidates:
        if t <= n and n % t == 0:
            return t
    return n


def _layer_norm(x, g, b):
    # Two-pass (mean-subtracted) statistics: avoids catastrophic cancellation
    # of E[x^2] - E[x]^2 when the residual stream develops large means.
    mu = jnp.mean(x, axis=-1, keepdims=True)
    xc = x - mu
    var = jnp.mean(xc * xc, axis=-1, keepdims=True)
    return xc * jax.lax.rsqrt(var + EPS) * g + b


def _const_spec(shape):
    # Grid-invariant operand (weights / biases / LN params): its block index
    # never changes, so a second pipeline buffer is pure VMEM waste.
    return pl.BlockSpec(shape, lambda *_: (0,) * len(shape),
                        pipeline_mode=pl.Buffered(1))


# ----------------------------------------------------------------------------
# Kernel 1: pre-LN + fused QKV projection + in-VMEM head split.
# ----------------------------------------------------------------------------
def qkv_kernel(x_ref, g_ref, b_ref, wqkv_ref, bqkv_ref,
               q_ref, k_ref, v_ref, *, heads, dh, q_scale):
    x = x_ref[0].astype(jnp.float32)                          # (TS, D)
    xn = _layer_norm(x, g_ref[...], b_ref[...])
    qkv = jnp.dot(xn.astype(jnp.bfloat16), wqkv_ref[...],
                  preferred_element_type=jnp.float32) + bqkv_ref[...]
    d = heads * dh
    # Head split here in VMEM so the wrapper never transposes in HBM.
    for h in range(heads):
        q_ref[0, h] = (qkv[:, h * dh:(h + 1) * dh] * q_scale).astype(jnp.bfloat16)
        k_ref[0, h] = qkv[:, d + h * dh:d + (h + 1) * dh].astype(jnp.bfloat16)
        v_ref[0, h] = qkv[:, 2 * d + h * dh:2 * d + (h + 1) * dh].astype(jnp.bfloat16)


def qkv_proj(x, ln_g, ln_b, wqkv, bqkv, heads):
    B, S, D = x.shape
    dh = D // heads
    ts = _pick_tile(S)
    # Fold both the 1/sqrt(dh) softmax scale and log2(e) (exp2 softmax) into q.
    q_scale = LOG2E / math.sqrt(dh)

    out_sd = jax.ShapeDtypeStruct((B, heads, S, dh), jnp.bfloat16)
    x_spec = pl.BlockSpec((1, ts, D), lambda b, si: (b, si, 0))
    head_spec = pl.BlockSpec((1, heads, ts, dh), lambda b, si: (b, 0, si, 0))
    return pl.pallas_call(
        functools.partial(qkv_kernel, heads=heads, dh=dh, q_scale=q_scale),
        out_shape=(out_sd, out_sd, out_sd),
        grid=(B, S // ts),
        in_specs=[x_spec,
                  _const_spec((1, D)), _const_spec((1, D)),
                  _const_spec((D, 3 * D)), _const_spec((1, 3 * D))],
        out_specs=(head_spec, head_spec, head_spec),
        compiler_params=pltpu.CompilerParams(
            dimension_semantics=("parallel", "parallel"),
            vmem_limit_bytes=VMEM_LIMIT),
    )(x, ln_g, ln_b, wqkv, bqkv)


# ----------------------------------------------------------------------------
# Kernel 2: flash-style multi-head attention with padded-KV-tile skip and
#           in-kernel head merge (lane-dense (B, S, D) output).
# ----------------------------------------------------------------------------
def attn_kernel(nvt_ref, bias_ref, q_ref, k_ref, v_ref, o_ref,
                m_sc, l_sc, acc_sc, *, heads, dh):
    b = pl.program_id(0)
    kj = pl.program_id(2)

    @pl.when(kj == 0)
    def _():
        m_sc[...] = jnp.full_like(m_sc, -jnp.inf)
        l_sc[...] = jnp.zeros_like(l_sc)
        acc_sc[...] = jnp.zeros_like(acc_sc)

    # Skip KV tiles that lie entirely in the trailing padded region.
    @pl.when(kj < nvt_ref[b])
    def _():
        # q already carries log2(e)/sqrt(dh) -> online softmax in exp2 domain.
        s = jnp.einsum('hqd,hkd->hqk', q_ref[0], k_ref[0],
                       preferred_element_type=jnp.float32)
        s = s + bias_ref[...]                     # (1,1,TKV) f32 key-pad bias
        m_prev = m_sc[...]
        m_new = jnp.maximum(m_prev, jnp.max(s, axis=-1, keepdims=True))
        alpha = jnp.exp2(m_prev - m_new)
        p = jnp.exp2(s - m_new)
        l_sc[...] = alpha * l_sc[...] + jnp.sum(p, axis=-1, keepdims=True)
        acc_sc[...] = alpha * acc_sc[...] + jnp.einsum(
            'hqk,hkd->hqd', p.astype(jnp.bfloat16), v_ref[0],
            preferred_element_type=jnp.float32)
        m_sc[...] = m_new

    @pl.when(kj == pl.num_programs(2) - 1)
    def _():
        o = acc_sc[...] * pl.reciprocal(l_sc[...], approx=True)  # (H,TQ,dh)
        # Merge heads in VMEM -> lane-dense (TQ, D) block, no wrapper transpose.
        for h in range(heads):
            o_ref[0, :, h * dh:(h + 1) * dh] = o[h].astype(o_ref.dtype)


def flash_attention(q4, k4, v4, mask_bias, valid_len):
    B, H, S, dh = q4.shape
    D = H * dh
    tq = _pick_tile(S)
    tkv = _pick_tile(S)
    nk = S // tkv
    # Number of KV tiles containing at least one non-padded key (clamped >= 1
    # so the all-padding degenerate case still produces finite output).
    nvt = jnp.clip((valid_len + tkv - 1) // tkv, 1, nk).astype(jnp.int32)

    def kv_map(b, qi, kj, nvt_ref):
        return (b, 0, jnp.minimum(kj, nvt_ref[b] - 1), 0)

    def bias_map(b, qi, kj, nvt_ref):
        return (b, 0, jnp.minimum(kj, nvt_ref[b] - 1))

    grid_spec = pltpu.PrefetchScalarGridSpec(
        num_scalar_prefetch=1,
        grid=(B, S // tq, nk),
        in_specs=[
            pl.BlockSpec((1, 1, tkv), bias_map),
            pl.BlockSpec((1, H, tq, dh), lambda b, qi, kj, nvt_ref: (b, 0, qi, 0)),
            pl.BlockSpec((1, H, tkv, dh), kv_map),
            pl.BlockSpec((1, H, tkv, dh), kv_map),
        ],
        out_specs=pl.BlockSpec((1, tq, D), lambda b, qi, kj, nvt_ref: (b, qi, 0)),
        scratch_shapes=[pltpu.VMEM((H, tq, 1), jnp.float32),
                        pltpu.VMEM((H, tq, 1), jnp.float32),
                        pltpu.VMEM((H, tq, dh), jnp.float32)],
    )
    return pl.pallas_call(
        functools.partial(attn_kernel, heads=H, dh=dh),
        out_shape=jax.ShapeDtypeStruct((B, S, D), jnp.bfloat16),
        grid_spec=grid_spec,
        compiler_params=pltpu.CompilerParams(
            dimension_semantics=("parallel", "parallel", "arbitrary"),
            vmem_limit_bytes=VMEM_LIMIT),
    )(nvt, mask_bias, q4, k4, v4)


# ----------------------------------------------------------------------------
# Kernel 3: output projection + residual + pre-LN FFN (tiled over d_ff)
#           + residual (+ fused encoder-final LayerNorm on the last layer).
# ----------------------------------------------------------------------------
def out_ffn_kernel(ctx_ref, x_ref, wo_ref, bo_ref, g2_ref, beta2_ref,
                   w1_ref, b1_ref, w2_ref, b2_ref, gf_ref, bf_ref,
                   o_ref, out1_sc, yn_sc, acc_sc, *, apply_final_ln):
    f = pl.program_id(2)

    @pl.when(f == 0)
    def _():
        attn = jnp.dot(ctx_ref[0], wo_ref[...],
                       preferred_element_type=jnp.float32) + bo_ref[...]
        out1 = attn + x_ref[0].astype(jnp.float32)   # dropout == identity
        out1_sc[...] = out1
        yn_sc[...] = _layer_norm(out1, g2_ref[...],
                                 beta2_ref[...]).astype(jnp.bfloat16)
        acc_sc[...] = jnp.zeros_like(acc_sc)

    h = jnp.maximum(
        jnp.dot(yn_sc[...], w1_ref[...],
                preferred_element_type=jnp.float32) + b1_ref[...], 0.0)
    acc_sc[...] += jnp.dot(h.astype(jnp.bfloat16), w2_ref[...],
                           preferred_element_type=jnp.float32)

    @pl.when(f == pl.num_programs(2) - 1)
    def _():
        y = acc_sc[...] + b2_ref[...] + out1_sc[...]
        if apply_final_ln:                           # static flag
            y = _layer_norm(y, gf_ref[...], bf_ref[...])
        o_ref[0] = y.astype(o_ref.dtype)


def out_proj_ffn(ctx, x, lp, lnf_g, lnf_b, apply_final_ln):
    B, S, D = x.shape
    d_ff = lp["w1"].shape[1]
    ts = _pick_tile(S)
    tff = _pick_tile(d_ff, candidates=(2048, 1024, 512, 256, 128))
    # Residual stream stays bf16 between layers; the encoder output is f32.
    out_dtype = jnp.float32 if apply_final_ln else jnp.bfloat16

    seq_spec = pl.BlockSpec((1, ts, D), lambda b, si, f: (b, si, 0))
    return pl.pallas_call(
        functools.partial(out_ffn_kernel, apply_final_ln=apply_final_ln),
        out_shape=jax.ShapeDtypeStruct((B, S, D), out_dtype),
        grid=(B, S // ts, d_ff // tff),
        in_specs=[seq_spec, seq_spec,
                  _const_spec((D, D)), _const_spec((1, D)),
                  _const_spec((1, D)), _const_spec((1, D)),
                  pl.BlockSpec((D, tff), lambda b, si, f: (0, f)),
                  pl.BlockSpec((1, tff), lambda b, si, f: (0, f)),
                  pl.BlockSpec((tff, D), lambda b, si, f: (f, 0)),
                  _const_spec((1, D)),
                  _const_spec((1, D)), _const_spec((1, D))],
        out_specs=seq_spec,
        scratch_shapes=[pltpu.VMEM((ts, D), jnp.float32),
                        pltpu.VMEM((ts, D), jnp.bfloat16),
                        pltpu.VMEM((ts, D), jnp.float32)],
        compiler_params=pltpu.CompilerParams(
            dimension_semantics=("parallel", "parallel", "arbitrary"),
            vmem_limit_bytes=VMEM_LIMIT),
    )(ctx, x, lp["wo"], lp["bo"], lp["ln2_g"], lp["ln2_b"],
      lp["w1"], lp["b1"], lp["w2"], lp["b2"], lnf_g, lnf_b)


# ----------------------------------------------------------------------------
# Layer + encoder wrappers (no layout plumbing left between kernels).
# ----------------------------------------------------------------------------
def encoder_layer(x, mask_bias, valid_len, lp, heads, lnf_g, lnf_b,
                  apply_final_ln):
    q, k, v = qkv_proj(x, lp["ln1_g"], lp["ln1_b"], lp["wqkv"], lp["bqkv"],
                       heads)                                # (B, H, S, dh)
    ctx = flash_attention(q, k, v, mask_bias, valid_len)     # (B, S, D) bf16
    return out_proj_ffn(ctx, x, lp, lnf_g, lnf_b, apply_final_ln)


def transformer_encoder_forward(src, params, heads, padding_idx):
    """Mirrors TransformerEncoder.forward(src, lengths=None).

    src: (seq_len, batch) int32 token ids.
    Returns (emb, memory_bank, lengths).
    """
    # embeddings(src): plain word-embedding lookup (padding row is zero).
    # TODO(synk): OpenNMT's injected Embeddings adds sinusoidal positional
    # encoding and sqrt(d_model) scaling; approximated by a plain lookup here.
    emb = jnp.take(params["embedding"], src, axis=0)          # (S, B, D) f32
    out = jnp.transpose(emb, (1, 0, 2)).astype(jnp.bfloat16)  # bf16 residual
    words = src.T                                             # (B, S)
    pad = words == padding_idx
    S = words.shape[1]
    # Key-padding mask folded into an additive f32 bias once, outside kernels.
    mask_bias = jnp.where(pad, NEG_BIAS, 0.0).astype(jnp.float32)[:, None, :]
    # Last non-padded key index + 1 per batch row; trailing all-padding KV
    # tiles are skipped (interior padding is still handled by the bias).
    pos = jnp.arange(S, dtype=jnp.int32)[None, :]
    valid_len = jnp.max(jnp.where(pad, 0, pos + 1), axis=1).astype(jnp.int32)

    n = len(params["layers"])
    for i, lp in enumerate(params["layers"]):
        out = encoder_layer(out, mask_bias, valid_len, lp, heads,
                            params["ln_g"], params["ln_b"],
                            apply_final_ln=(i == n - 1))
    if n == 0:  # degenerate config: final LN not fused anywhere
        out = _layer_norm(out.astype(jnp.float32),
                          params["ln_g"], params["ln_b"])
    return emb, jnp.transpose(out, (1, 0, 2)), None


def init_params(key, num_layers, vocab, d_model, d_ff, padding_idx):
    keys = jax.random.split(key, 1 + 4 * max(num_layers, 1))
    emb = 0.1 * jax.random.normal(keys[0], (vocab, d_model), jnp.float32)
    emb = emb.at[padding_idx].set(0.0)

    def nrm(k, shape):  # bf16 weights: 2x MXU throughput, half HBM/VMEM
        w = (1.0 / math.sqrt(shape[0])) * jax.random.normal(k, shape,
                                                            jnp.float32)
        return w.astype(jnp.bfloat16)

    layers = []
    ki = 1
    for _ in range(num_layers):
        layers.append(dict(
            ln1_g=jnp.ones((1, d_model), jnp.float32),
            ln1_b=jnp.zeros((1, d_model), jnp.float32),
            wqkv=nrm(keys[ki + 0], (d_model, 3 * d_model)),
            bqkv=jnp.zeros((1, 3 * d_model), jnp.float32),
            wo=nrm(keys[ki + 1], (d_model, d_model)),
            bo=jnp.zeros((1, d_model), jnp.float32),
            ln2_g=jnp.ones((1, d_model), jnp.float32),
            ln2_b=jnp.zeros((1, d_model), jnp.float32),
            w1=nrm(keys[ki + 2], (d_model, d_ff)),
            b1=jnp.zeros((1, d_ff), jnp.float32),
            w2=nrm(keys[ki + 3], (d_ff, d_model)),
            b2=jnp.zeros((1, d_model), jnp.float32),
        ))
        ki += 4
    return dict(embedding=emb, layers=layers,
                ln_g=jnp.ones((1, d_model), jnp.float32),
                ln_b=jnp.zeros((1, d_model), jnp.float32))


if __name__ == "__main__":
    # Small config: num_layers=2, d_model=32, heads=4, d_ff=64, dropout=0 (eval)
    num_layers, d_model, heads, d_ff = 2, 32, 4, 64
    vocab, padding_idx = 16, 1
    seq_len, batch = 8, 2

    key = jax.random.PRNGKey(0)
    k_tok, k_par = jax.random.split(key)
    src = jax.random.randint(k_tok, (seq_len, batch), 0, vocab, dtype=jnp.int32)
    # Inject a couple of padding tokens so the attention mask is exercised.
    src = src.at[-1, 0].set(padding_idx)
    src = src.at[-2, 1].set(padding_idx)

    params = init_params(k_par, num_layers, vocab, d_model, d_ff, padding_idx)

    fwd = jax.jit(functools.partial(transformer_encoder_forward,
                                    heads=heads, padding_idx=padding_idx))
    emb, memory_bank, lengths = fwd(src, params)
    jax.block_until_ready(memory_bank)

    assert emb.shape == (seq_len, batch, d_model)
    assert memory_bank.shape == (seq_len, batch, d_model)
    assert bool(jnp.all(jnp.isfinite(memory_bank)))
    print("KERNEL_OK")
</pallas_src>

<mosaic_0001>
module attributes {stable_mosaic.version = 11 : i64} {
  func.func @attn_kernel(%arg0: i32, %arg1: i32, %arg2: i32, %arg3: memref<2xi32, #tpu.memory_space<smem>>, %arg4: memref<1x1x8xf32, #tpu.memory_space<vmem>>, %arg5: memref<1x4x8x8xbf16, #tpu.memory_space<vmem>>, %arg6: memref<1x4x8x8xbf16, #tpu.memory_space<vmem>>, %arg7: memref<1x4x8x8xbf16, #tpu.memory_space<vmem>>, %arg8: memref<1x8x32xbf16, #tpu.memory_space<vmem>>, %arg9: memref<4x8x1xf32, #tpu.memory_space<vmem>>, %arg10: memref<4x8x1xf32, #tpu.memory_space<vmem>>, %arg11: memref<4x8x8xf32, #tpu.memory_space<vmem>>) attributes {dimension_semantics = [#tpu.dimension_semantics<parallel>, #tpu.dimension_semantics<parallel>, #tpu.dimension_semantics<arbitrary>], iteration_bounds = array<i64: 2, 1, 1>, scalar_prefetch = 1 : i64, scratch_operands = 3 : i64, tpu.core_type = #tpu.core_type<tc>, window_params = [{transform_indices = @transform_0, window_bounds = array<i64: 1, 1, 8>}, {transform_indices = @transform_1, window_bounds = array<i64: 1, 4, 8, 8>}, {transform_indices = @transform_2, window_bounds = array<i64: 1, 4, 8, 8>}, {transform_indices = @transform_3, window_bounds = array<i64: 1, 4, 8, 8>}, {transform_indices = @transform_4, window_bounds = array<i64: 1, 8, 32>}]} {
    %c0_i32 = arith.constant 0 : i32
    %0 = arith.cmpi eq, %arg2, %c0_i32 : i32
    %1 = arith.extui %0 : i1 to i32
    %c0_i32_0 = arith.constant 0 : i32
    %2 = arith.cmpi ne, %1, %c0_i32_0 : i32
    scf.if %2 {
      %cst = arith.constant 0xFF800000 : f32
      %11 = vector.broadcast %cst : f32 to vector<4x8x1xf32>
      %c0 = arith.constant 0 : index
      %c0_4 = arith.constant 0 : index
      %c0_5 = arith.constant 0 : index
      %12 = vector.load %arg9[%c0, %c0_4, %c0_5] : memref<4x8x1xf32, #tpu.memory_space<vmem>>, vector<4x8x1xf32>
      tpu.vector_store %arg9[%c0, %c0_4, %c0_5], %11 {strides = array<i32>} : memref<4x8x1xf32, #tpu.memory_space<vmem>>, vector<4x8x1xf32>,
      %cst_6 = arith.constant 0.000000e+00 : f32
      %13 = vector.broadcast %cst_6 : f32 to vector<4x8x1xf32>
      %c0_7 = arith.constant 0 : index
      %c0_8 = arith.constant 0 : index
      %c0_9 = arith.constant 0 : index
      %14 = vector.load %arg10[%c0_7, %c0_8, %c0_9] : memref<4x8x1xf32, #tpu.memory_space<vmem>>, vector<4x8x1xf32>
      tpu.vector_store %arg10[%c0_7, %c0_8, %c0_9], %13 {strides = array<i32>} : memref<4x8x1xf32, #tpu.memory_space<vmem>>, vector<4x8x1xf32>,
      %cst_10 = arith.constant 0.000000e+00 : f32
      %15 = vector.broadcast %cst_10 : f32 to vector<4x8x8xf32>
      %c0_11 = arith.constant 0 : index
      %c0_12 = arith.constant 0 : index
      %c0_13 = arith.constant 0 : index
      %16 = vector.load %arg11[%c0_11, %c0_12, %c0_13] : memref<4x8x8xf32, #tpu.memory_space<vmem>>, vector<4x8x8xf32>
      tpu.vector_store %arg11[%c0_11, %c0_12, %c0_13], %15 {strides = array<i32>} : memref<4x8x8xf32, #tpu.memory_space<vmem>>, vector<4x8x8xf32>,
    } else {
    }
    %3 = arith.index_cast %arg0 : i32 to index
    %4 = memref.load %arg3[%3] : memref<2xi32, #tpu.memory_space<smem>>
    %5 = arith.cmpi slt, %arg2, %4 : i32
    %6 = arith.extui %5 : i1 to i32
    %c0_i32_1 = arith.constant 0 : i32
    %7 = arith.cmpi ne, %6, %c0_i32_1 : i32
    scf.if %7 {
      %c0 = arith.constant 0 : index
      %c0_4 = arith.constant 0 : index
      %c0_5 = arith.constant 0 : index
      %c0_6 = arith.constant 0 : index
      %11 = vector.load %arg5[%c0, %c0_4, %c0_5, %c0_6] : memref<1x4x8x8xbf16, #tpu.memory_space<vmem>>, vector<1x4x8x8xbf16>
      %12 = vector.shape_cast %11 : vector<1x4x8x8xbf16> to vector<4x8x8xbf16>
      %c0_7 = arith.constant 0 : index
      %c0_8 = arith.constant 0 : index
      %c0_9 = arith.constant 0 : index
      %c0_10 = arith.constant 0 : index
      %13 = vector.load %arg6[%c0_7, %c0_8, %c0_9, %c0_10] : memref<1x4x8x8xbf16, #tpu.memory_space<vmem>>, vector<1x4x8x8xbf16>
      %14 = vector.shape_cast %13 : vector<1x4x8x8xbf16> to vector<4x8x8xbf16>
      "tpu.trace_start"() <{level = 10 : i32, message = "hqd,hkd->hqk"}> : () -> ()
      %cst = arith.constant dense<0.000000e+00> : vector<4x8x8xf32>
      %15 = tpu.matmul %12, %14, %cst {dimension_numbers = #tpu.dot_dimension_numbers<[2], [2], [1], [1], [0, 0, 0, 1, 1, 1], [0], [0]>} : vector<4x8x8xbf16>, vector<4x8x8xbf16>, vector<4x8x8xf32> -> vector<4x8x8xf32>
      "tpu.trace_stop"() : () -> ()
      %c0_11 = arith.constant 0 : index
      %c0_12 = arith.constant 0 : index
      %c0_13 = arith.constant 0 : index
      %16 = vector.load %arg4[%c0_11, %c0_12, %c0_13] : memref<1x1x8xf32, #tpu.memory_space<vmem>>, vector<1x1x8xf32>
      %17 = vector.broadcast %16 : vector<1x1x8xf32> to vector<4x8x8xf32>
      %18 = arith.addf %15, %17 : vector<4x8x8xf32>
      %c0_14 = arith.constant 0 : index
      %c0_15 = arith.constant 0 : index
      %c0_16 = arith.constant 0 : index
      %19 = vector.load %arg9[%c0_14, %c0_15, %c0_16] : memref<4x8x1xf32, #tpu.memory_space<vmem>>, vector<4x8x1xf32>
      %cst_17 = arith.constant dense<0xFF800000> : vector<4x8xf32>
      %20 = vector.multi_reduction <maximumf>, %18, %cst_17 [2] : vector<4x8x8xf32> to vector<4x8xf32>
      %21 = vector.shape_cast %20 : vector<4x8xf32> to vector<4x8x1xf32>
      %22 = arith.maximumf %19, %21 : vector<4x8x1xf32>
      %23 = arith.subf %19, %22 : vector<4x8x1xf32>
      %24 = math.exp2 %23 : vector<4x8x1xf32>
      %25 = vector.broadcast %22 : vector<4x8x1xf32> to vector<4x8x8xf32>
      %26 = arith.subf %18, %25 : vector<4x8x8xf32>
      %27 = math.exp2 %26 : vector<4x8x8xf32>
      %c0_18 = arith.constant 0 : index
      %c0_19 = arith.constant 0 : index
      %c0_20 = arith.constant 0 : index
      %28 = vector.load %arg10[%c0_18, %c0_19, %c0_20] : memref<4x8x1xf32, #tpu.memory_space<vmem>>, vector<4x8x1xf32>
      %29 = arith.mulf %24, %28 : vector<4x8x1xf32>
      %cst_21 = arith.constant dense<0.000000e+00> : vector<4x8xf32>
      %30 = vector.multi_reduction <add>, %27, %cst_21 [2] : vector<4x8x8xf32> to vector<4x8xf32>
      %31 = vector.shape_cast %30 : vector<4x8xf32> to vector<4x8x1xf32>
      %32 = arith.addf %29, %31 : vector<4x8x1xf32>
      %c0_22 = arith.constant 0 : index
      %c0_23 = arith.constant 0 : index
      %c0_24 = arith.constant 0 : index
      %33 = vector.load %arg10[%c0_22, %c0_23, %c0_24] : memref<4x8x1xf32, #tpu.memory_space<vmem>>, vector<4x8x1xf32>
      tpu.vector_store %arg10[%c0_22, %c0_23, %c0_24], %32 {strides = array<i32>} : memref<4x8x1xf32, #tpu.memory_space<vmem>>, vector<4x8x1xf32>,
      %c0_25 = arith.constant 0 : index
      %c0_26 = arith.constant 0 : index
      %c0_27 = arith.constant 0 : index
      %34 = vector.load %arg11[%c0_25, %c0_26, %c0_27] : memref<4x8x8xf32, #tpu.memory_space<vmem>>, vector<4x8x8xf32>
      %35 = vector.broadcast %24 : vector<4x8x1xf32> to vector<4x8x8xf32>
      %36 = arith.mulf %35, %34 : vector<4x8x8xf32>
      %37 = arith.truncf %27 : vector<4x8x8xf32> to vector<4x8x8xbf16>
      %c0_28 = arith.constant 0 : index
      %c0_29 = arith.constant 0 : index
      %c0_30 = arith.constant 0 : index
      %c0_31 = arith.constant 0 : index
      %38 = vector.load %arg7[%c0_28, %c0_29, %c0_30, %c0_31] : memref<1x4x8x8xbf16, #tpu.memory_space<vmem>>, vector<1x4x8x8xbf16>
      %39 = vector.shape_cast %38 : vector<1x4x8x8xbf16> to vector<4x8x8xbf16>
      "tpu.trace_start"() <{level = 10 : i32, message = "hqk,hkd->hqd"}> : () -> ()
      %cst_32 = arith.constant dense<0.000000e+00> : vector<4x8x8xf32>
      %40 = tpu.matmul %37, %39, %cst_32 {dimension_numbers = #tpu.dot_dimension_numbers<[2], [1], [1], [2], [0, 0, 0, 1, 1, 2], [0], [0]>} : vector<4x8x8xbf16>, vector<4x8x8xbf16>, vector<4x8x8xf32> -> vector<4x8x8xf32>
      "tpu.trace_stop"() : () -> ()
      %41 = arith.addf %36, %40 : vector<4x8x8xf32>
      %c0_33 = arith.constant 0 : index
      %c0_34 = arith.constant 0 : index
      %c0_35 = arith.constant 0 : index
      %42 = vector.load %arg11[%c0_33, %c0_34, %c0_35] : memref<4x8x8xf32, #tpu.memory_space<vmem>>, vector<4x8x8xf32>
      tpu.vector_store %arg11[%c0_33, %c0_34, %c0_35], %41 {strides = array<i32>} : memref<4x8x8xf32, #tpu.memory_space<vmem>>, vector<4x8x8xf32>,
      %c0_36 = arith.constant 0 : index
      %c0_37 = arith.constant 0 : index
      %c0_38 = arith.constant 0 : index
      %43 = vector.load %arg9[%c0_36, %c0_37, %c0_38] : memref<4x8x1xf32, #tpu.memory_space<vmem>>, vector<4x8x1xf32>
      tpu.vector_store %arg9[%c0_36, %c0_37, %c0_38], %22 {strides = array<i32>} : memref<4x8x1xf32, #tpu.memory_space<vmem>>, vector<4x8x1xf32>,
    } else {
    }
    %c0_i32_2 = arith.constant 0 : i32
    %8 = arith.cmpi eq, %arg2, %c0_i32_2 : i32
    %9 = arith.extui %8 : i1 to i32
    %c0_i32_3 = arith.constant 0 : i32
    %10 = arith.cmpi ne, %9, %c0_i32_3 : i32
    scf.if %10 {
      %c0 = arith.constant 0 : index
      %c0_4 = arith.constant 0 : index
      %c0_5 = arith.constant 0 : index
      %11 = vector.load %arg11[%c0, %c0_4, %c0_5] : memref<4x8x8xf32, #tpu.memory_space<vmem>>, vector<4x8x8xf32>
      %c0_6 = arith.constant 0 : index
      %c0_7 = arith.constant 0 : index
      %c0_8 = arith.constant 0 : index
      %12 = vector.load %arg10[%c0_6, %c0_7, %c0_8] : memref<4x8x1xf32, #tpu.memory_space<vmem>>, vector<4x8x1xf32>
      %13 = tpu.reciprocal %12 {approx = true} : vector<4x8x1xf32> -> vector<4x8x1xf32>
      %14 = vector.broadcast %13 : vector<4x8x1xf32> to vector<4x8x8xf32>
      %15 = arith.mulf %11, %14 : vector<4x8x8xf32>
      %16 = vector.extract_strided_slice %15 {offsets = [0, 0, 0], sizes = [1, 8, 8], strides = [1, 1, 1]} : vector<4x8x8xf32> to vector<1x8x8xf32>
      %17 = vector.shape_cast %16 : vector<1x8x8xf32> to vector<8x8xf32>
      %18 = arith.truncf %17 : vector<8x8xf32> to vector<8x8xbf16>
      %c0_9 = arith.constant 0 : index
      %c0_10 = arith.constant 0 : index
      %c0_11 = arith.constant 0 : index
      %19 = vector.load %arg8[%c0_9, %c0_10, %c0_11] : memref<1x8x32xbf16, #tpu.memory_space<vmem>>, vector<1x8x8xbf16>
      %20 = vector.shape_cast %19 : vector<1x8x8xbf16> to vector<8x8xbf16>
      %21 = vector.shape_cast %18 : vector<8x8xbf16> to vector<1x8x8xbf16>
      tpu.vector_store %arg8[%c0_9, %c0_10, %c0_11], %21 {strides = array<i32>} : memref<1x8x32xbf16, #tpu.memory_space<vmem>>, vector<1x8x8xbf16>,
      %22 = vector.extract_strided_slice %15 {offsets = [1, 0, 0], sizes = [1, 8, 8], strides = [1, 1, 1]} : vector<4x8x8xf32> to vector<1x8x8xf32>
      %23 = vector.shape_cast %22 : vector<1x8x8xf32> to vector<8x8xf32>
      %24 = arith.truncf %23 : vector<8x8xf32> to vector<8x8xbf16>
      %c0_12 = arith.constant 0 : index
      %c0_13 = arith.constant 0 : index
      %c8 = arith.constant 8 : index
      %25 = vector.load %arg8[%c0_12, %c0_13, %c8] : memref<1x8x32xbf16, #tpu.memory_space<vmem>>, vector<1x8x8xbf16>
      %26 = vector.shape_cast %25 : vector<1x8x8xbf16> to vector<8x8xbf16>
      %27 = vector.shape_cast %24 : vector<8x8xbf16> to vector<1x8x8xbf16>
      tpu.vector_store %arg8[%c0_12, %c0_13, %c8], %27 {strides = array<i32>} : memref<1x8x32xbf16, #tpu.memory_space<vmem>>, vector<1x8x8xbf16>,
      %28 = vector.extract_strided_slice %15 {offsets = [2, 0, 0], sizes = [1, 8, 8], strides = [1, 1, 1]} : vector<4x8x8xf32> to vector<1x8x8xf32>
      %29 = vector.shape_cast %28 : vector<1x8x8xf32> to vector<8x8xf32>
      %30 = arith.truncf %29 : vector<8x8xf32> to vector<8x8xbf16>
      %c0_14 = arith.constant 0 : index
      %c0_15 = arith.constant 0 : index
      %c16 = arith.constant 16 : index
      %31 = vector.load %arg8[%c0_14, %c0_15, %c16] : memref<1x8x32xbf16, #tpu.memory_space<vmem>>, vector<1x8x8xbf16>
      %32 = vector.shape_cast %31 : vector<1x8x8xbf16> to vector<8x8xbf16>
      %33 = vector.shape_cast %30 : vector<8x8xbf16> to vector<1x8x8xbf16>
      tpu.vector_store %arg8[%c0_14, %c0_15, %c16], %33 {strides = array<i32>} : memref<1x8x32xbf16, #tpu.memory_space<vmem>>, vector<1x8x8xbf16>,
      %34 = vector.extract_strided_slice %15 {offsets = [3, 0, 0], sizes = [1, 8, 8], strides = [1, 1, 1]} : vector<4x8x8xf32> to vector<1x8x8xf32>
      %35 = vector.shape_cast %34 : vector<1x8x8xf32> to vector<8x8xf32>
      %36 = arith.truncf %35 : vector<8x8xf32> to vector<8x8xbf16>
      %c0_16 = arith.constant 0 : index
      %c0_17 = arith.constant 0 : index
      %c24 = arith.constant 24 : index
      %37 = vector.load %arg8[%c0_16, %c0_17, %c24] : memref<1x8x32xbf16, #tpu.memory_space<vmem>>, vector<1x8x8xbf16>
      %38 = vector.shape_cast %37 : vector<1x8x8xbf16> to vector<8x8xbf16>
      %39 = vector.shape_cast %36 : vector<8x8xbf16> to vector<1x8x8xbf16>
      tpu.vector_store %arg8[%c0_16, %c0_17, %c24], %39 {strides = array<i32>} : memref<1x8x32xbf16, #tpu.memory_space<vmem>>, vector<1x8x8xbf16>,
    } else {
    }
    return
  }
  func.func @transform_0(%arg0: i32, %arg1: i32, %arg2: i32, %arg3: memref<2xi32, #tpu.memory_space<smem>>) -> (i32, i32, i32) {
    %0 = arith.index_cast %arg0 : i32 to index
    %1 = memref.load %arg3[%0] : memref<2xi32, #tpu.memory_space<smem>>
    %c1_i32 = arith.constant 1 : i32
    %2 = arith.subi %1, %c1_i32 : i32
    %3 = arith.minsi %arg2, %2 : i32
    %c0_i32 = arith.constant 0 : i32
    %c0_i32_0 = arith.constant 0 : i32
    return %arg0, %c0_i32, %3 : i32, i32, i32
  }
  func.func @transform_1(%arg0: i32, %arg1: i32, %arg2: i32, %arg3: memref<2xi32, #tpu.memory_space<smem>>) -> (i32, i32, i32, i32) {
    %c0_i32 = arith.constant 0 : i32
    %c0_i32_0 = arith.constant 0 : i32
    %c0_i32_1 = arith.constant 0 : i32
    return %arg0, %c0_i32, %arg1, %c0_i32_0 : i32, i32, i32, i32
  }
  func.func @transform_2(%arg0: i32, %arg1: i32, %arg2: i32, %arg3: memref<2xi32, #tpu.memory_space<smem>>) -> (i32, i32, i32, i32) {
    %0 = arith.index_cast %arg0 : i32 to index
    %1 = memref.load %arg3[%0] : memref<2xi32, #tpu.memory_space<smem>>
    %c1_i32 = arith.constant 1 : i32
    %2 = arith.subi %1, %c1_i32 : i32
    %3 = arith.minsi %arg2, %2 : i32
    %c0_i32 = arith.constant 0 : i32
    %c0_i32_0 = arith.constant 0 : i32
    %c0_i32_1 = arith.constant 0 : i32
    return %arg0, %c0_i32, %3, %c0_i32_0 : i32, i32, i32, i32
  }
  func.func @transform_3(%arg0: i32, %arg1: i32, %arg2: i32, %arg3: memref<2xi32, #tpu.memory_space<smem>>) -> (i32, i32, i32, i32) {
    %0 = arith.index_cast %arg0 : i32 to index
    %1 = memref.load %arg3[%0] : memref<2xi32, #tpu.memory_space<smem>>
    %c1_i32 = arith.constant 1 : i32
    %2 = arith.subi %1, %c1_i32 : i32
    %3 = arith.minsi %arg2, %2 : i32
    %c0_i32 = arith.constant 0 : i32
    %c0_i32_0 = arith.constant 0 : i32
    %c0_i32_1 = arith.constant 0 : i32
    return %arg0, %c0_i32, %3, %c0_i32_0 : i32, i32, i32, i32
  }
  func.func @transform_4(%arg0: i32, %arg1: i32, %arg2: i32, %arg3: memref<2xi32, #tpu.memory_space<smem>>) -> (i32, i32, i32) {
    %c0_i32 = arith.constant 0 : i32
    %c0_i32_0 = arith.constant 0 : i32
    return %arg0, %arg1, %c0_i32 : i32, i32, i32
  }
}

module attributes {stable_mosaic.version = 11 : i64} {
  func.func @qkv_kernel(%arg0: i32, %arg1: i32, %arg2: memref<1x8x32xbf16, #tpu.memory_space<vmem>>, %arg3: memref<1x32xf32, #tpu.memory_space<vmem>>, %arg4: memref<1x32xf32, #tpu.memory_space<vmem>>, %arg5: memref<32x96xbf16, #tpu.memory_space<vmem>>, %arg6: memref<1x96xf32, #tpu.memory_space<vmem>>, %arg7: memref<1x4x8x8xbf16, #tpu.memory_space<vmem>>, %arg8: memref<1x4x8x8xbf16, #tpu.memory_space<vmem>>, %arg9: memref<1x4x8x8xbf16, #tpu.memory_space<vmem>>) attributes {dimension_semantics = [#tpu.dimension_semantics<parallel>, #tpu.dimension_semantics<parallel>], iteration_bounds = array<i64: 2, 1>, scalar_prefetch = 0 : i64, scratch_operands = 0 : i64, tpu.core_type = #tpu.core_type<tc>, window_params = [{transform_indices = @transform_0, window_bounds = array<i64: 1, 8, 32>}, {pipeline_mode = #tpu.pipeline_mode<synchronous>, transform_indices = @transform_1, window_bounds = array<i64: 1, 32>}, {pipeline_mode = #tpu.pipeline_mode<synchronous>, transform_indices = @transform_2, window_bounds = array<i64: 1, 32>}, {pipeline_mode = #tpu.pipeline_mode<synchronous>, transform_indices = @transform_3, window_bounds = array<i64: 32, 96>}, {pipeline_mode = #tpu.pipeline_mode<synchronous>, transform_indices = @transform_4, window_bounds = array<i64: 1, 96>}, {transform_indices = @transform_5, window_bounds = array<i64: 1, 4, 8, 8>}, {transform_indices = @transform_6, window_bounds = array<i64: 1, 4, 8, 8>}, {transform_indices = @transform_7, window_bounds = array<i64: 1, 4, 8, 8>}]} {
    %c0 = arith.constant 0 : index
    %c0_0 = arith.constant 0 : index
    %c0_1 = arith.constant 0 : index
    %0 = vector.load %arg2[%c0, %c0_0, %c0_1] : memref<1x8x32xbf16, #tpu.memory_space<vmem>>, vector<1x8x32xbf16>
    %1 = vector.shape_cast %0 : vector<1x8x32xbf16> to vector<8x32xbf16>
    %2 = arith.extf %1 : vector<8x32xbf16> to vector<8x32xf32>
    %c0_2 = arith.constant 0 : index
    %c0_3 = arith.constant 0 : index
    %3 = vector.load %arg3[%c0_2, %c0_3] : memref<1x32xf32, #tpu.memory_space<vmem>>, vector<1x32xf32>
    %c0_4 = arith.constant 0 : index
    %c0_5 = arith.constant 0 : index
    %4 = vector.load %arg4[%c0_4, %c0_5] : memref<1x32xf32, #tpu.memory_space<vmem>>, vector<1x32xf32>
    %cst = arith.constant dense<0.000000e+00> : vector<8xf32>
    %5 = vector.multi_reduction <add>, %2, %cst [1] : vector<8x32xf32> to vector<8xf32>
    %6 = vector.shape_cast %5 : vector<8xf32> to vector<8x1xf32>
    %cst_6 = arith.constant 3.200000e+01 : f32
    %7 = vector.broadcast %cst_6 : f32 to vector<8x1xf32>
    %8 = arith.divf %6, %7 : vector<8x1xf32>
    %9 = vector.broadcast %8 : vector<8x1xf32> to vector<8x32xf32>
    %10 = arith.subf %2, %9 : vector<8x32xf32>
    %11 = arith.mulf %10, %10 : vector<8x32xf32>
    %cst_7 = arith.constant dense<0.000000e+00> : vector<8xf32>
    %12 = vector.multi_reduction <add>, %11, %cst_7 [1] : vector<8x32xf32> to vector<8xf32>
    %13 = vector.shape_cast %12 : vector<8xf32> to vector<8x1xf32>
    %cst_8 = arith.constant 3.200000e+01 : f32
    %14 = vector.broadcast %cst_8 : f32 to vector<8x1xf32>
    %15 = arith.divf %13, %14 : vector<8x1xf32>
    %cst_9 = arith.constant 9.99999997E-7 : f32
    %16 = vector.broadcast %cst_9 : f32 to vector<8x1xf32>
    %17 = arith.addf %15, %16 : vector<8x1xf32>
    %18 = math.rsqrt %17 : vector<8x1xf32>
    %19 = vector.broadcast %18 : vector<8x1xf32> to vector<8x32xf32>
    %20 = arith.mulf %10, %19 : vector<8x32xf32>
    %21 = vector.broadcast %3 : vector<1x32xf32> to vector<8x32xf32>
    %22 = arith.mulf %20, %21 : vector<8x32xf32>
    %23 = vector.broadcast %4 : vector<1x32xf32> to vector<8x32xf32>
    %24 = arith.addf %22, %23 : vector<8x32xf32>
    %25 = arith.truncf %24 : vector<8x32xf32> to vector<8x32xbf16>
    %c0_10 = arith.constant 0 : index
    %c0_11 = arith.constant 0 : index
    %26 = vector.load %arg5[%c0_10, %c0_11] : memref<32x96xbf16, #tpu.memory_space<vmem>>, vector<32x96xbf16>
    %cst_12 = arith.constant dense<0.000000e+00> : vector<8x96xf32>
    %27 = tpu.matmul %25, %26, %cst_12 {dimension_numbers = #tpu.dot_dimension_numbers<[1], [0], [0], [1], [0, 0, 1, 1], [], []>} : vector<8x32xbf16>, vector<32x96xbf16>, vector<8x96xf32> -> vector<8x96xf32>
    %c0_13 = arith.constant 0 : index
    %c0_14 = arith.constant 0 : index
    %28 = vector.load %arg6[%c0_13, %c0_14] : memref<1x96xf32, #tpu.memory_space<vmem>>, vector<1x96xf32>
    %29 = vector.broadcast %28 : vector<1x96xf32> to vector<8x96xf32>
    %30 = arith.addf %27, %29 : vector<8x96xf32>
    %31 = vector.extract_strided_slice %30 {offsets = [0, 0], sizes = [8, 8], strides = [1, 1]} : vector<8x96xf32> to vector<8x8xf32>
    %cst_15 = arith.constant 0.510069728 : f32
    %32 = vector.broadcast %cst_15 : f32 to vector<8x8xf32>
    %33 = arith.mulf %31, %32 : vector<8x8xf32>
    %34 = arith.truncf %33 : vector<8x8xf32> to vector<8x8xbf16>
    %c0_16 = arith.constant 0 : index
    %c0_17 = arith.constant 0 : index
    %c0_18 = arith.constant 0 : index
    %c0_19 = arith.constant 0 : index
    %35 = vector.load %arg7[%c0_16, %c0_17, %c0_18, %c0_19] : memref<1x4x8x8xbf16, #tpu.memory_space<vmem>>, vector<1x1x8x8xbf16>
    %36 = vector.shape_cast %35 : vector<1x1x8x8xbf16> to vector<8x8xbf16>
    %37 = vector.shape_cast %34 : vector<8x8xbf16> to vector<1x1x8x8xbf16>
    tpu.vector_store %arg7[%c0_16, %c0_17, %c0_18, %c0_19], %37 {strides = array<i32>} : memref<1x4x8x8xbf16, #tpu.memory_space<vmem>>, vector<1x1x8x8xbf16>,
    %38 = vector.extract_strided_slice %30 {offsets = [0, 32], sizes = [8, 8], strides = [1, 1]} : vector<8x96xf32> to vector<8x8xf32>
    %39 = arith.truncf %38 : vector<8x8xf32> to vector<8x8xbf16>
    %c0_20 = arith.constant 0 : index
    %c0_21 = arith.constant 0 : index
    %c0_22 = arith.constant 0 : index
    %c0_23 = arith.constant 0 : index
    %40 = vector.load %arg8[%c0_20, %c0_21, %c0_22, %c0_23] : memref<1x4x8x8xbf16, #tpu.memory_space<vmem>>, vector<1x1x8x8xbf16>
    %41 = vector.shape_cast %40 : vector<1x1x8x8xbf16> to vector<8x8xbf16>
    %42 = vector.shape_cast %39 : vector<8x8xbf16> to vector<1x1x8x8xbf16>
    tpu.vector_store %arg8[%c0_20, %c0_21, %c0_22, %c0_23], %42 {strides = array<i32>} : memref<1x4x8x8xbf16, #tpu.memory_space<vmem>>, vector<1x1x8x8xbf16>,
    %43 = vector.extract_strided_slice %30 {offsets = [0, 64], sizes = [8, 8], strides = [1, 1]} : vector<8x96xf32> to vector<8x8xf32>
    %44 = arith.truncf %43 : vector<8x8xf32> to vector<8x8xbf16>
    %c0_24 = arith.constant 0 : index
    %c0_25 = arith.constant 0 : index
    %c0_26 = arith.constant 0 : index
    %c0_27 = arith.constant 0 : index
    %45 = vector.load %arg9[%c0_24, %c0_25, %c0_26, %c0_27] : memref<1x4x8x8xbf16, #tpu.memory_space<vmem>>, vector<1x1x8x8xbf16>
    %46 = vector.shape_cast %45 : vector<1x1x8x8xbf16> to vector<8x8xbf16>
    %47 = vector.shape_cast %44 : vector<8x8xbf16> to vector<1x1x8x8xbf16>
    tpu.vector_store %arg9[%c0_24, %c0_25, %c0_26, %c0_27], %47 {strides = array<i32>} : memref<1x4x8x8xbf16, #tpu.memory_space<vmem>>, vector<1x1x8x8xbf16>,
    %48 = vector.extract_strided_slice %30 {offsets = [0, 8], sizes = [8, 8], strides = [1, 1]} : vector<8x96xf32> to vector<8x8xf32>
    %cst_28 = arith.constant 0.510069728 : f32
    %49 = vector.broadcast %cst_28 : f32 to vector<8x8xf32>
    %50 = arith.mulf %48, %49 : vector<8x8xf32>
    %51 = arith.truncf %50 : vector<8x8xf32> to vector<8x8xbf16>
    %c0_29 = arith.constant 0 : index
    %c1 = arith.constant 1 : index
    %c0_30 = arith.constant 0 : index
    %c0_31 = arith.constant 0 : index
    %52 = vector.load %arg7[%c0_29, %c1, %c0_30, %c0_31] : memref<1x4x8x8xbf16, #tpu.memory_space<vmem>>, vector<1x1x8x8xbf16>
    %53 = vector.shape_cast %52 : vector<1x1x8x8xbf16> to vector<8x8xbf16>
    %54 = vector.shape_cast %51 : vector<8x8xbf16> to vector<1x1x8x8xbf16>
    tpu.vector_store %arg7[%c0_29, %c1, %c0_30, %c0_31], %54 {strides = array<i32>} : memref<1x4x8x8xbf16, #tpu.memory_space<vmem>>, vector<1x1x8x8xbf16>,
    %55 = vector.extract_strided_slice %30 {offsets = [0, 40], sizes = [8, 8], strides = [1, 1]} : vector<8x96xf32> to vector<8x8xf32>
    %56 = arith.truncf %55 : vector<8x8xf32> to vector<8x8xbf16>
    %c0_32 = arith.constant 0 : index
    %c1_33 = arith.constant 1 : index
    %c0_34 = arith.constant 0 : index
    %c0_35 = arith.constant 0 : index
    %57 = vector.load %arg8[%c0_32, %c1_33, %c0_34, %c0_35] : memref<1x4x8x8xbf16, #tpu.memory_space<vmem>>, vector<1x1x8x8xbf16>
    %58 = vector.shape_cast %57 : vector<1x1x8x8xbf16> to vector<8x8xbf16>
    %59 = vector.shape_cast %56 : vector<8x8xbf16> to vector<1x1x8x8xbf16>
    tpu.vector_store %arg8[%c0_32, %c1_33, %c0_34, %c0_35], %59 {strides = array<i32>} : memref<1x4x8x8xbf16, #tpu.memory_space<vmem>>, vector<1x1x8x8xbf16>,
    %60 = vector.extract_strided_slice %30 {offsets = [0, 72], sizes = [8, 8], strides = [1, 1]} : vector<8x96xf32> to vector<8x8xf32>
    %61 = arith.truncf %60 : vector<8x8xf32> to vector<8x8xbf16>
    %c0_36 = arith.constant 0 : index
    %c1_37 = arith.constant 1 : index
    %c0_38 = arith.constant 0 : index
    %c0_39 = arith.constant 0 : index
    %62 = vector.load %arg9[%c0_36, %c1_37, %c0_38, %c0_39] : memref<1x4x8x8xbf16, #tpu.memory_space<vmem>>, vector<1x1x8x8xbf16>
    %63 = vector.shape_cast %62 : vector<1x1x8x8xbf16> to vector<8x8xbf16>
    %64 = vector.shape_cast %61 : vector<8x8xbf16> to vector<1x1x8x8xbf16>
    tpu.vector_store %arg9[%c0_36, %c1_37, %c0_38, %c0_39], %64 {strides = array<i32>} : memref<1x4x8x8xbf16, #tpu.memory_space<vmem>>, vector<1x1x8x8xbf16>,
    %65 = vector.extract_strided_slice %30 {offsets = [0, 16], sizes = [8, 8], strides = [1, 1]} : vector<8x96xf32> to vector<8x8xf32>
    %cst_40 = arith.constant 0.510069728 : f32
    %66 = vector.broadcast %cst_40 : f32 to vector<8x8xf32>
    %67 = arith.mulf %65, %66 : vector<8x8xf32>
    %68 = arith.truncf %67 : vector<8x8xf32> to vector<8x8xbf16>
    %c0_41 = arith.constant 0 : index
    %c2 = arith.constant 2 : index
    %c0_42 = arith.constant 0 : index
    %c0_43 = arith.constant 0 : index
    %69 = vector.load %arg7[%c0_41, %c2, %c0_42, %c0_43] : memref<1x4x8x8xbf16, #tpu.memory_space<vmem>>, vector<1x1x8x8xbf16>
    %70 = vector.shape_cast %69 : vector<1x1x8x8xbf16> to vector<8x8xbf16>
    %71 = vector.shape_cast %68 : vector<8x8xbf16> to vector<1x1x8x8xbf16>
    tpu.vector_store %arg7[%c0_41, %c2, %c0_42, %c0_43], %71 {strides = array<i32>} : memref<1x4x8x8xbf16, #tpu.memory_space<vmem>>, vector<1x1x8x8xbf16>,
    %72 = vector.extract_strided_slice %30 {offsets = [0, 48], sizes = [8, 8], strides = [1, 1]} : vector<8x96xf32> to vector<8x8xf32>
    %73 = arith.truncf %72 : vector<8x8xf32> to vector<8x8xbf16>
    %c0_44 = arith.constant 0 : index
    %c2_45 = arith.constant 2 : index
    %c0_46 = arith.constant 0 : index
    %c0_47 = arith.constant 0 : index
    %74 = vector.load %arg8[%c0_44, %c2_45, %c0_46, %c0_47] : memref<1x4x8x8xbf16, #tpu.memory_space<vmem>>, vector<1x1x8x8xbf16>
    %75 = vector.shape_cast %74 : vector<1x1x8x8xbf16> to vector<8x8xbf16>
    %76 = vector.shape_cast %73 : vector<8x8xbf16> to vector<1x1x8x8xbf16>
    tpu.vector_store %arg8[%c0_44, %c2_45, %c0_46, %c0_47], %76 {strides = array<i32>} : memref<1x4x8x8xbf16, #tpu.memory_space<vmem>>, vector<1x1x8x8xbf16>,
    %77 = vector.extract_strided_slice %30 {offsets = [0, 80], sizes = [8, 8], strides = [1, 1]} : vector<8x96xf32> to vector<8x8xf32>
    %78 = arith.truncf %77 : vector<8x8xf32> to vector<8x8xbf16>
    %c0_48 = arith.constant 0 : index
    %c2_49 = arith.constant 2 : index
    %c0_50 = arith.constant 0 : index
    %c0_51 = arith.constant 0 : index
    %79 = vector.load %arg9[%c0_48, %c2_49, %c0_50, %c0_51] : memref<1x4x8x8xbf16, #tpu.memory_space<vmem>>, vector<1x1x8x8xbf16>
    %80 = vector.shape_cast %79 : vector<1x1x8x8xbf16> to vector<8x8xbf16>
    %81 = vector.shape_cast %78 : vector<8x8xbf16> to vector<1x1x8x8xbf16>
    tpu.vector_store %arg9[%c0_48, %c2_49, %c0_50, %c0_51], %81 {strides = array<i32>} : memref<1x4x8x8xbf16, #tpu.memory_space<vmem>>, vector<1x1x8x8xbf16>,
    %82 = vector.extract_strided_slice %30 {offsets = [0, 24], sizes = [8, 8], strides = [1, 1]} : vector<8x96xf32> to vector<8x8xf32>
    %cst_52 = arith.constant 0.510069728 : f32
    %83 = vector.broadcast %cst_52 : f32 to vector<8x8xf32>
    %84 = arith.mulf %82, %83 : vector<8x8xf32>
    %85 = arith.truncf %84 : vector<8x8xf32> to vector<8x8xbf16>
    %c0_53 = arith.constant 0 : index
    %c3 = arith.constant 3 : index
    %c0_54 = arith.constant 0 : index
    %c0_55 = arith.constant 0 : index
    %86 = vector.load %arg7[%c0_53, %c3, %c0_54, %c0_55] : memref<1x4x8x8xbf16, #tpu.memory_space<vmem>>, vector<1x1x8x8xbf16>
    %87 = vector.shape_cast %86 : vector<1x1x8x8xbf16> to vector<8x8xbf16>
    %88 = vector.shape_cast %85 : vector<8x8xbf16> to vector<1x1x8x8xbf16>
    tpu.vector_store %arg7[%c0_53, %c3, %c0_54, %c0_55], %88 {strides = array<i32>} : memref<1x4x8x8xbf16, #tpu.memory_space<vmem>>, vector<1x1x8x8xbf16>,
    %89 = vector.extract_strided_slice %30 {offsets = [0, 56], sizes = [8, 8], strides = [1, 1]} : vector<8x96xf32> to vector<8x8xf32>
    %90 = arith.truncf %89 : vector<8x8xf32> to vector<8x8xbf16>
    %c0_56 = arith.constant 0 : index
    %c3_57 = arith.constant 3 : index
    %c0_58 = arith.constant 0 : index
    %c0_59 = arith.constant 0 : index
    %91 = vector.load %arg8[%c0_56, %c3_57, %c0_58, %c0_59] : memref<1x4x8x8xbf16, #tpu.memory_space<vmem>>, vector<1x1x8x8xbf16>
    %92 = vector.shape_cast %91 : vector<1x1x8x8xbf16> to vector<8x8xbf16>
    %93 = vector.shape_cast %90 : vector<8x8xbf16> to vector<1x1x8x8xbf16>
    tpu.vector_store %arg8[%c0_56, %c3_57, %c0_58, %c0_59], %93 {strides = array<i32>} : memref<1x4x8x8xbf16, #tpu.memory_space<vmem>>, vector<1x1x8x8xbf16>,
    %94 = vector.extract_strided_slice %30 {offsets = [0, 88], sizes = [8, 8], strides = [1, 1]} : vector<8x96xf32> to vector<8x8xf32>
    %95 = arith.truncf %94 : vector<8x8xf32> to vector<8x8xbf16>
    %c0_60 = arith.constant 0 : index
    %c3_61 = arith.constant 3 : index
    %c0_62 = arith.constant 0 : index
    %c0_63 = arith.constant 0 : index
    %96 = vector.load %arg9[%c0_60, %c3_61, %c0_62, %c0_63] : memref<1x4x8x8xbf16, #tpu.memory_space<vmem>>, vector<1x1x8x8xbf16>
    %97 = vector.shape_cast %96 : vector<1x1x8x8xbf16> to vector<8x8xbf16>
    %98 = vector.shape_cast %95 : vector<8x8xbf16> to vector<1x1x8x8xbf16>
    tpu.vector_store %arg9[%c0_60, %c3_61, %c0_62, %c0_63], %98 {strides = array<i32>} : memref<1x4x8x8xbf16, #tpu.memory_space<vmem>>, vector<1x1x8x8xbf16>,
    return
  }
  func.func @transform_0(%arg0: i32, %arg1: i32) -> (i32, i32, i32) {
    %c0_i32 = arith.constant 0 : i32
    %c0_i32_0 = arith.constant 0 : i32
    return %arg0, %arg1, %c0_i32 : i32, i32, i32
  }
  func.func @transform_1(%arg0: i32, %arg1: i32) -> (i32, i32) {
    %c0_i32 = arith.constant 0 : i32
    %c0_i32_0 = arith.constant 0 : i32
    %c0_i32_1 = arith.constant 0 : i32
    return %c0_i32, %c0_i32_0 : i32, i32
  }
  func.func @transform_2(%arg0: i32, %arg1: i32) -> (i32, i32) {
    %c0_i32 = arith.constant 0 : i32
    %c0_i32_0 = arith.constant 0 : i32
    %c0_i32_1 = arith.constant 0 : i32
    return %c0_i32, %c0_i32_0 : i32, i32
  }
  func.func @transform_3(%arg0: i32, %arg1: i32) -> (i32, i32) {
    %c0_i32 = arith.constant 0 : i32
    %c0_i32_0 = arith.constant 0 : i32
    %c0_i32_1 = arith.constant 0 : i32
    return %c0_i32, %c0_i32_0 : i32, i32
  }
  func.func @transform_4(%arg0: i32, %arg1: i32) -> (i32, i32) {
    %c0_i32 = arith.constant 0 : i32
    %c0_i32_0 = arith.constant 0 : i32
    %c0_i32_1 = arith.constant 0 : i32
    return %c0_i32, %c0_i32_0 : i32, i32
  }
  func.func @transform_5(%arg0: i32, %arg1: i32) -> (i32, i32, i32, i32) {
    %c0_i32 = arith.constant 0 : i32
    %c0_i32_0 = arith.constant 0 : i32
    %c0_i32_1 = arith.constant 0 : i32
    return %arg0, %c0_i32, %arg1, %c0_i32_0 : i32, i32, i32, i32
  }
  func.func @transform_6(%arg0: i32, %arg1: i32) -> (i32, i32, i32, i32) {
    %c0_i32 = arith.constant 0 : i32
    %c0_i32_0 = arith.constant 0 : i32
    %c0_i32_1 = arith.constant 0 : i32
    return %arg0, %c0_i32, %arg1, %c0_i32_0 : i32, i32, i32, i32
  }
  func.func @transform_7(%arg0: i32, %arg1: i32) -> (i32, i32, i32, i32) {
    %c0_i32 = arith.constant 0 : i32
    %c0_i32_0 = arith.constant 0 : i32
    %c0_i32_1 = arith.constant 0 : i32
    return %arg0, %c0_i32, %arg1, %c0_i32_0 : i32, i32, i32, i32
  }
}

module attributes {stable_mosaic.version = 11 : i64} {
  func.func @out_ffn_kernel(%arg0: i32, %arg1: i32, %arg2: i32, %arg3: memref<1x8x32xbf16, #tpu.memory_space<vmem>>, %arg4: memref<1x8x32xbf16, #tpu.memory_space<vmem>>, %arg5: memref<32x32xbf16, #tpu.memory_space<vmem>>, %arg6: memref<1x32xf32, #tpu.memory_space<vmem>>, %arg7: memref<1x32xf32, #tpu.memory_space<vmem>>, %arg8: memref<1x32xf32, #tpu.memory_space<vmem>>, %arg9: memref<32x64xbf16, #tpu.memory_space<vmem>>, %arg10: memref<1x64xf32, #tpu.memory_space<vmem>>, %arg11: memref<64x32xbf16, #tpu.memory_space<vmem>>, %arg12: memref<1x32xf32, #tpu.memory_space<vmem>>, %arg13: memref<1x32xf32, #tpu.memory_space<vmem>>, %arg14: memref<1x32xf32, #tpu.memory_space<vmem>>, %arg15: memref<1x8x32xbf16, #tpu.memory_space<vmem>>, %arg16: memref<8x32xf32, #tpu.memory_space<vmem>>, %arg17: memref<8x32xbf16, #tpu.memory_space<vmem>>, %arg18: memref<8x32xf32, #tpu.memory_space<vmem>>) attributes {dimension_semantics = [#tpu.dimension_semantics<parallel>, #tpu.dimension_semantics<parallel>, #tpu.dimension_semantics<arbitrary>], iteration_bounds = array<i64: 2, 1, 1>, scalar_prefetch = 0 : i64, scratch_operands = 3 : i64, tpu.core_type = #tpu.core_type<tc>, window_params = [{transform_indices = @transform_0, window_bounds = array<i64: 1, 8, 32>}, {transform_indices = @transform_1, window_bounds = array<i64: 1, 8, 32>}, {pipeline_mode = #tpu.pipeline_mode<synchronous>, transform_indices = @transform_2, window_bounds = array<i64: 32, 32>}, {pipeline_mode = #tpu.pipeline_mode<synchronous>, transform_indices = @transform_3, window_bounds = array<i64: 1, 32>}, {pipeline_mode = #tpu.pipeline_mode<synchronous>, transform_indices = @transform_4, window_bounds = array<i64: 1, 32>}, {pipeline_mode = #tpu.pipeline_mode<synchronous>, transform_indices = @transform_5, window_bounds = array<i64: 1, 32>}, {transform_indices = @transform_6, window_bounds = array<i64: 32, 64>}, {transform_indices = @transform_7, window_bounds = array<i64: 1, 64>}, {transform_indices = @transform_8, window_bounds = array<i64: 64, 32>}, {pipeline_mode = #tpu.pipeline_mode<synchronous>, transform_indices = @transform_9, window_bounds = array<i64: 1, 32>}, {pipeline_mode = #tpu.pipeline_mode<synchronous>, transform_indices = @transform_10, window_bounds = array<i64: 1, 32>}, {pipeline_mode = #tpu.pipeline_mode<synchronous>, transform_indices = @transform_11, window_bounds = array<i64: 1, 32>}, {transform_indices = @transform_12, window_bounds = array<i64: 1, 8, 32>}]} {
    %c0_i32 = arith.constant 0 : i32
    %0 = arith.cmpi eq, %arg2, %c0_i32 : i32
    %1 = arith.extui %0 : i1 to i32
    %c0_i32_0 = arith.constant 0 : i32
    %2 = arith.cmpi ne, %1, %c0_i32_0 : i32
    scf.if %2 {
      %c0_16 = arith.constant 0 : index
      %c0_17 = arith.constant 0 : index
      %c0_18 = arith.constant 0 : index
      %20 = vector.load %arg3[%c0_16, %c0_17, %c0_18] : memref<1x8x32xbf16, #tpu.memory_space<vmem>>, vector<1x8x32xbf16>
      %21 = vector.shape_cast %20 : vector<1x8x32xbf16> to vector<8x32xbf16>
      %c0_19 = arith.constant 0 : index
      %c0_20 = arith.constant 0 : index
      %22 = vector.load %arg5[%c0_19, %c0_20] : memref<32x32xbf16, #tpu.memory_space<vmem>>, vector<32x32xbf16>
      %cst_21 = arith.constant dense<0.000000e+00> : vector<8x32xf32>
      %23 = tpu.matmul %21, %22, %cst_21 {dimension_numbers = #tpu.dot_dimension_numbers<[1], [0], [0], [1], [0, 0, 1, 1], [], []>} : vector<8x32xbf16>, vector<32x32xbf16>, vector<8x32xf32> -> vector<8x32xf32>
      %c0_22 = arith.constant 0 : index
      %c0_23 = arith.constant 0 : index
      %24 = vector.load %arg6[%c0_22, %c0_23] : memref<1x32xf32, #tpu.memory_space<vmem>>, vector<1x32xf32>
      %25 = vector.broadcast %24 : vector<1x32xf32> to vector<8x32xf32>
      %26 = arith.addf %23, %25 : vector<8x32xf32>
      %c0_24 = arith.constant 0 : index
      %c0_25 = arith.constant 0 : index
      %c0_26 = arith.constant 0 : index
      %27 = vector.load %arg4[%c0_24, %c0_25, %c0_26] : memref<1x8x32xbf16, #tpu.memory_space<vmem>>, vector<1x8x32xbf16>
      %28 = vector.shape_cast %27 : vector<1x8x32xbf16> to vector<8x32xbf16>
      %29 = arith.extf %28 : vector<8x32xbf16> to vector<8x32xf32>
      %30 = arith.addf %26, %29 : vector<8x32xf32>
      %c0_27 = arith.constant 0 : index
      %c0_28 = arith.constant 0 : index
      %31 = vector.load %arg16[%c0_27, %c0_28] : memref<8x32xf32, #tpu.memory_space<vmem>>, vector<8x32xf32>
      tpu.vector_store %arg16[%c0_27, %c0_28], %30 {strides = array<i32>} : memref<8x32xf32, #tpu.memory_space<vmem>>, vector<8x32xf32>,
      %c0_29 = arith.constant 0 : index
      %c0_30 = arith.constant 0 : index
      %32 = vector.load %arg7[%c0_29, %c0_30] : memref<1x32xf32, #tpu.memory_space<vmem>>, vector<1x32xf32>
      %c0_31 = arith.constant 0 : index
      %c0_32 = arith.constant 0 : index
      %33 = vector.load %arg8[%c0_31, %c0_32] : memref<1x32xf32, #tpu.memory_space<vmem>>, vector<1x32xf32>
      %cst_33 = arith.constant dense<0.000000e+00> : vector<8xf32>
      %34 = vector.multi_reduction <add>, %30, %cst_33 [1] : vector<8x32xf32> to vector<8xf32>
      %35 = vector.shape_cast %34 : vector<8xf32> to vector<8x1xf32>
      %cst_34 = arith.constant 3.200000e+01 : f32
      %36 = vector.broadcast %cst_34 : f32 to vector<8x1xf32>
      %37 = arith.divf %35, %36 : vector<8x1xf32>
      %38 = vector.broadcast %37 : vector<8x1xf32> to vector<8x32xf32>
      %39 = arith.subf %30, %38 : vector<8x32xf32>
      %40 = arith.mulf %39, %39 : vector<8x32xf32>
      %cst_35 = arith.constant dense<0.000000e+00> : vector<8xf32>
      %41 = vector.multi_reduction <add>, %40, %cst_35 [1] : vector<8x32xf32> to vector<8xf32>
      %42 = vector.shape_cast %41 : vector<8xf32> to vector<8x1xf32>
      %cst_36 = arith.constant 3.200000e+01 : f32
      %43 = vector.broadcast %cst_36 : f32 to vector<8x1xf32>
      %44 = arith.divf %42, %43 : vector<8x1xf32>
      %cst_37 = arith.constant 9.99999997E-7 : f32
      %45 = vector.broadcast %cst_37 : f32 to vector<8x1xf32>
      %46 = arith.addf %44, %45 : vector<8x1xf32>
      %47 = math.rsqrt %46 : vector<8x1xf32>
      %48 = vector.broadcast %47 : vector<8x1xf32> to vector<8x32xf32>
      %49 = arith.mulf %39, %48 : vector<8x32xf32>
      %50 = vector.broadcast %32 : vector<1x32xf32> to vector<8x32xf32>
      %51 = arith.mulf %49, %50 : vector<8x32xf32>
      %52 = vector.broadcast %33 : vector<1x32xf32> to vector<8x32xf32>
      %53 = arith.addf %51, %52 : vector<8x32xf32>
      %54 = arith.truncf %53 : vector<8x32xf32> to vector<8x32xbf16>
      %c0_38 = arith.constant 0 : index
      %c0_39 = arith.constant 0 : index
      %55 = vector.load %arg17[%c0_38, %c0_39] : memref<8x32xbf16, #tpu.memory_space<vmem>>, vector<8x32xbf16>
      tpu.vector_store %arg17[%c0_38, %c0_39], %54 {strides = array<i32>} : memref<8x32xbf16, #tpu.memory_space<vmem>>, vector<8x32xbf16>,
      %cst_40 = arith.constant 0.000000e+00 : f32
      %56 = vector.broadcast %cst_40 : f32 to vector<8x32xf32>
      %c0_41 = arith.constant 0 : index
      %c0_42 = arith.constant 0 : index
      %57 = vector.load %arg18[%c0_41, %c0_42] : memref<8x32xf32, #tpu.memory_space<vmem>>, vector<8x32xf32>
      tpu.vector_store %arg18[%c0_41, %c0_42], %56 {strides = array<i32>} : memref<8x32xf32, #tpu.memory_space<vmem>>, vector<8x32xf32>,
    } else {
    }
    %c0 = arith.constant 0 : index
    %c0_1 = arith.constant 0 : index
    %3 = vector.load %arg17[%c0, %c0_1] : memref<8x32xbf16, #tpu.memory_space<vmem>>, vector<8x32xbf16>
    %c0_2 = arith.constant 0 : index
    %c0_3 = arith.constant 0 : index
    %4 = vector.load %arg9[%c0_2, %c0_3] : memref<32x64xbf16, #tpu.memory_space<vmem>>, vector<32x64xbf16>
    %cst = arith.constant dense<0.000000e+00> : vector<8x64xf32>
    %5 = tpu.matmul %3, %4, %cst {dimension_numbers = #tpu.dot_dimension_numbers<[1], [0], [0], [1], [0, 0, 1, 1], [], []>} : vector<8x32xbf16>, vector<32x64xbf16>, vector<8x64xf32> -> vector<8x64xf32>
    %c0_4 = arith.constant 0 : index
    %c0_5 = arith.constant 0 : index
    %6 = vector.load %arg10[%c0_4, %c0_5] : memref<1x64xf32, #tpu.memory_space<vmem>>, vector<1x64xf32>
    %7 = vector.broadcast %6 : vector<1x64xf32> to vector<8x64xf32>
    %8 = arith.addf %5, %7 : vector<8x64xf32>
    %cst_6 = arith.constant 0.000000e+00 : f32
    %9 = vector.broadcast %cst_6 : f32 to vector<8x64xf32>
    %10 = arith.maximumf %8, %9 : vector<8x64xf32>
    %c0_7 = arith.constant 0 : index
    %c0_8 = arith.constant 0 : index
    %11 = vector.load %arg18[%c0_7, %c0_8] : memref<8x32xf32, #tpu.memory_space<vmem>>, vector<8x32xf32>
    %12 = arith.truncf %10 : vector<8x64xf32> to vector<8x64xbf16>
    %c0_9 = arith.constant 0 : index
    %c0_10 = arith.constant 0 : index
    %13 = vector.load %arg11[%c0_9, %c0_10] : memref<64x32xbf16, #tpu.memory_space<vmem>>, vector<64x32xbf16>
    %cst_11 = arith.constant dense<0.000000e+00> : vector<8x32xf32>
    %14 = tpu.matmul %12, %13, %cst_11 {dimension_numbers = #tpu.dot_dimension_numbers<[1], [0], [0], [1], [0, 0, 1, 1], [], []>} : vector<8x64xbf16>, vector<64x32xbf16>, vector<8x32xf32> -> vector<8x32xf32>
    %15 = arith.addf %11, %14 : vector<8x32xf32>
    %c0_12 = arith.constant 0 : index
    %c0_13 = arith.constant 0 : index
    %16 = vector.load %arg18[%c0_12, %c0_13] : memref<8x32xf32, #tpu.memory_space<vmem>>, vector<8x32xf32>
    tpu.vector_store %arg18[%c0_12, %c0_13], %15 {strides = array<i32>} : memref<8x32xf32, #tpu.memory_space<vmem>>, vector<8x32xf32>,
    %c0_i32_14 = arith.constant 0 : i32
    %17 = arith.cmpi eq, %arg2, %c0_i32_14 : i32
    %18 = arith.extui %17 : i1 to i32
    %c0_i32_15 = arith.constant 0 : i32
    %19 = arith.cmpi ne, %18, %c0_i32_15 : i32
    scf.if %19 {
      %c0_16 = arith.constant 0 : index
      %c0_17 = arith.constant 0 : index
      %20 = vector.load %arg18[%c0_16, %c0_17] : memref<8x32xf32, #tpu.memory_space<vmem>>, vector<8x32xf32>
      %c0_18 = arith.constant 0 : index
      %c0_19 = arith.constant 0 : index
      %21 = vector.load %arg12[%c0_18, %c0_19] : memref<1x32xf32, #tpu.memory_space<vmem>>, vector<1x32xf32>
      %22 = vector.broadcast %21 : vector<1x32xf32> to vector<8x32xf32>
      %23 = arith.addf %20, %22 : vector<8x32xf32>
      %c0_20 = arith.constant 0 : index
      %c0_21 = arith.constant 0 : index
      %24 = vector.load %arg16[%c0_20, %c0_21] : memref<8x32xf32, #tpu.memory_space<vmem>>, vector<8x32xf32>
      %25 = arith.addf %23, %24 : vector<8x32xf32>
      %26 = arith.truncf %25 : vector<8x32xf32> to vector<8x32xbf16>
      %c0_22 = arith.constant 0 : index
      %c0_23 = arith.constant 0 : index
      %c0_24 = arith.constant 0 : index
      %27 = vector.load %arg15[%c0_22, %c0_23, %c0_24] : memref<1x8x32xbf16, #tpu.memory_space<vmem>>, vector<1x8x32xbf16>
      %28 = vector.shape_cast %27 : vector<1x8x32xbf16> to vector<8x32xbf16>
      %29 = vector.shape_cast %26 : vector<8x32xbf16> to vector<1x8x32xbf16>
      tpu.vector_store %arg15[%c0_22, %c0_23, %c0_24], %29 {strides = array<i32>} : memref<1x8x32xbf16, #tpu.memory_space<vmem>>, vector<1x8x32xbf16>,
    } else {
    }
    return
  }
  func.func @transform_0(%arg0: i32, %arg1: i32, %arg2: i32) -> (i32, i32, i32) {
    %c0_i32 = arith.constant 0 : i32
    %c0_i32_0 = arith.constant 0 : i32
    return %arg0, %arg1, %c0_i32 : i32, i32, i32
  }
  func.func @transform_1(%arg0: i32, %arg1: i32, %arg2: i32) -> (i32, i32, i32) {
    %c0_i32 = arith.constant 0 : i32
    %c0_i32_0 = arith.constant 0 : i32
    return %arg0, %arg1, %c0_i32 : i32, i32, i32
  }
  func.func @transform_2(%arg0: i32, %arg1: i32, %arg2: i32) -> (i32, i32) {
    %c0_i32 = arith.constant 0 : i32
    %c0_i32_0 = arith.constant 0 : i32
    %c0_i32_1 = arith.constant 0 : i32
    return %c0_i32, %c0_i32_0 : i32, i32
  }
  func.func @transform_3(%arg0: i32, %arg1: i32, %arg2: i32) -> (i32, i32) {
    %c0_i32 = arith.constant 0 : i32
    %c0_i32_0 = arith.constant 0 : i32
    %c0_i32_1 = arith.constant 0 : i32
    return %c0_i32, %c0_i32_0 : i32, i32
  }
  func.func @transform_4(%arg0: i32, %arg1: i32, %arg2: i32) -> (i32, i32) {
    %c0_i32 = arith.constant 0 : i32
    %c0_i32_0 = arith.constant 0 : i32
    %c0_i32_1 = arith.constant 0 : i32
    return %c0_i32, %c0_i32_0 : i32, i32
  }
  func.func @transform_5(%arg0: i32, %arg1: i32, %arg2: i32) -> (i32, i32) {
    %c0_i32 = arith.constant 0 : i32
    %c0_i32_0 = arith.constant 0 : i32
    %c0_i32_1 = arith.constant 0 : i32
    return %c0_i32, %c0_i32_0 : i32, i32
  }
  func.func @transform_6(%arg0: i32, %arg1: i32, %arg2: i32) -> (i32, i32) {
    %c0_i32 = arith.constant 0 : i32
    %c0_i32_0 = arith.constant 0 : i32
    return %c0_i32, %arg2 : i32, i32
  }
  func.func @transform_7(%arg0: i32, %arg1: i32, %arg2: i32) -> (i32, i32) {
    %c0_i32 = arith.constant 0 : i32
    %c0_i32_0 = arith.constant 0 : i32
    return %c0_i32, %arg2 : i32, i32
  }
  func.func @transform_8(%arg0: i32, %arg1: i32, %arg2: i32) -> (i32, i32) {
    %c0_i32 = arith.constant 0 : i32
    %c0_i32_0 = arith.constant 0 : i32
    return %arg2, %c0_i32 : i32, i32
  }
  func.func @transform_9(%arg0: i32, %arg1: i32, %arg2: i32) -> (i32, i32) {
    %c0_i32 = arith.constant 0 : i32
    %c0_i32_0 = arith.constant 0 : i32
    %c0_i32_1 = arith.constant 0 : i32
    return %c0_i32, %c0_i32_0 : i32, i32
  }
  func.func @transform_10(%arg0: i32, %arg1: i32, %arg2: i32) -> (i32, i32) {
    %c0_i32 = arith.constant 0 : i32
    %c0_i32_0 = arith.constant 0 : i32
    %c0_i32_1 = arith.constant 0 : i32
    return %c0_i32, %c0_i32_0 : i32, i32
  }
  func.func @transform_11(%arg0: i32, %arg1: i32, %arg2: i32) -> (i32, i32) {
    %c0_i32 = arith.constant 0 : i32
    %c0_i32_0 = arith.constant 0 : i32
    %c0_i32_1 = arith.constant 0 : i32
    return %c0_i32, %c0_i32_0 : i32, i32
  }
  func.func @transform_12(%arg0: i32, %arg1: i32, %arg2: i32) -> (i32, i32, i32) {
    %c0_i32 = arith.constant 0 : i32
    %c0_i32_0 = arith.constant 0 : i32
    return %arg0, %arg1, %c0_i32 : i32, i32, i32
  }
}

module attributes {stable_mosaic.version = 11 : i64} {
  func.func @out_ffn_kernel(%arg0: i32, %arg1: i32, %arg2: i32, %arg3: memref<1x8x32xbf16, #tpu.memory_space<vmem>>, %arg4: memref<1x8x32xbf16, #tpu.memory_space<vmem>>, %arg5: memref<32x32xbf16, #tpu.memory_space<vmem>>, %arg6: memref<1x32xf32, #tpu.memory_space<vmem>>, %arg7: memref<1x32xf32, #tpu.memory_space<vmem>>, %arg8: memref<1x32xf32, #tpu.memory_space<vmem>>, %arg9: memref<32x64xbf16, #tpu.memory_space<vmem>>, %arg10: memref<1x64xf32, #tpu.memory_space<vmem>>, %arg11: memref<64x32xbf16, #tpu.memory_space<vmem>>, %arg12: memref<1x32xf32, #tpu.memory_space<vmem>>, %arg13: memref<1x32xf32, #tpu.memory_space<vmem>>, %arg14: memref<1x32xf32, #tpu.memory_space<vmem>>, %arg15: memref<1x8x32xf32, #tpu.memory_space<vmem>>, %arg16: memref<8x32xf32, #tpu.memory_space<vmem>>, %arg17: memref<8x32xbf16, #tpu.memory_space<vmem>>, %arg18: memref<8x32xf32, #tpu.memory_space<vmem>>) attributes {dimension_semantics = [#tpu.dimension_semantics<parallel>, #tpu.dimension_semantics<parallel>, #tpu.dimension_semantics<arbitrary>], iteration_bounds = array<i64: 2, 1, 1>, scalar_prefetch = 0 : i64, scratch_operands = 3 : i64, tpu.core_type = #tpu.core_type<tc>, window_params = [{transform_indices = @transform_0, window_bounds = array<i64: 1, 8, 32>}, {transform_indices = @transform_1, window_bounds = array<i64: 1, 8, 32>}, {pipeline_mode = #tpu.pipeline_mode<synchronous>, transform_indices = @transform_2, window_bounds = array<i64: 32, 32>}, {pipeline_mode = #tpu.pipeline_mode<synchronous>, transform_indices = @transform_3, window_bounds = array<i64: 1, 32>}, {pipeline_mode = #tpu.pipeline_mode<synchronous>, transform_indices = @transform_4, window_bounds = array<i64: 1, 32>}, {pipeline_mode = #tpu.pipeline_mode<synchronous>, transform_indices = @transform_5, window_bounds = array<i64: 1, 32>}, {transform_indices = @transform_6, window_bounds = array<i64: 32, 64>}, {transform_indices = @transform_7, window_bounds = array<i64: 1, 64>}, {transform_indices = @transform_8, window_bounds = array<i64: 64, 32>}, {pipeline_mode = #tpu.pipeline_mode<synchronous>, transform_indices = @transform_9, window_bounds = array<i64: 1, 32>}, {pipeline_mode = #tpu.pipeline_mode<synchronous>, transform_indices = @transform_10, window_bounds = array<i64: 1, 32>}, {pipeline_mode = #tpu.pipeline_mode<synchronous>, transform_indices = @transform_11, window_bounds = array<i64: 1, 32>}, {transform_indices = @transform_12, window_bounds = array<i64: 1, 8, 32>}]} {
    %c0_i32 = arith.constant 0 : i32
    %0 = arith.cmpi eq, %arg2, %c0_i32 : i32
    %1 = arith.extui %0 : i1 to i32
    %c0_i32_0 = arith.constant 0 : i32
    %2 = arith.cmpi ne, %1, %c0_i32_0 : i32
    scf.if %2 {
      %c0_16 = arith.constant 0 : index
      %c0_17 = arith.constant 0 : index
      %c0_18 = arith.constant 0 : index
      %20 = vector.load %arg3[%c0_16, %c0_17, %c0_18] : memref<1x8x32xbf16, #tpu.memory_space<vmem>>, vector<1x8x32xbf16>
      %21 = vector.shape_cast %20 : vector<1x8x32xbf16> to vector<8x32xbf16>
      %c0_19 = arith.constant 0 : index
      %c0_20 = arith.constant 0 : index
      %22 = vector.load %arg5[%c0_19, %c0_20] : memref<32x32xbf16, #tpu.memory_space<vmem>>, vector<32x32xbf16>
      %cst_21 = arith.constant dense<0.000000e+00> : vector<8x32xf32>
      %23 = tpu.matmul %21, %22, %cst_21 {dimension_numbers = #tpu.dot_dimension_numbers<[1], [0], [0], [1], [0, 0, 1, 1], [], []>} : vector<8x32xbf16>, vector<32x32xbf16>, vector<8x32xf32> -> vector<8x32xf32>
      %c0_22 = arith.constant 0 : index
      %c0_23 = arith.constant 0 : index
      %24 = vector.load %arg6[%c0_22, %c0_23] : memref<1x32xf32, #tpu.memory_space<vmem>>, vector<1x32xf32>
      %25 = vector.broadcast %24 : vector<1x32xf32> to vector<8x32xf32>
      %26 = arith.addf %23, %25 : vector<8x32xf32>
      %c0_24 = arith.constant 0 : index
      %c0_25 = arith.constant 0 : index
      %c0_26 = arith.constant 0 : index
      %27 = vector.load %arg4[%c0_24, %c0_25, %c0_26] : memref<1x8x32xbf16, #tpu.memory_space<vmem>>, vector<1x8x32xbf16>
      %28 = vector.shape_cast %27 : vector<1x8x32xbf16> to vector<8x32xbf16>
      %29 = arith.extf %28 : vector<8x32xbf16> to vector<8x32xf32>
      %30 = arith.addf %26, %29 : vector<8x32xf32>
      %c0_27 = arith.constant 0 : index
      %c0_28 = arith.constant 0 : index
      %31 = vector.load %arg16[%c0_27, %c0_28] : memref<8x32xf32, #tpu.memory_space<vmem>>, vector<8x32xf32>
      tpu.vector_store %arg16[%c0_27, %c0_28], %30 {strides = array<i32>} : memref<8x32xf32, #tpu.memory_space<vmem>>, vector<8x32xf32>,
      %c0_29 = arith.constant 0 : index
      %c0_30 = arith.constant 0 : index
      %32 = vector.load %arg7[%c0_29, %c0_30] : memref<1x32xf32, #tpu.memory_space<vmem>>, vector<1x32xf32>
      %c0_31 = arith.constant 0 : index
      %c0_32 = arith.constant 0 : index
      %33 = vector.load %arg8[%c0_31, %c0_32] : memref<1x32xf32, #tpu.memory_space<vmem>>, vector<1x32xf32>
      %cst_33 = arith.constant dense<0.000000e+00> : vector<8xf32>
      %34 = vector.multi_reduction <add>, %30, %cst_33 [1] : vector<8x32xf32> to vector<8xf32>
      %35 = vector.shape_cast %34 : vector<8xf32> to vector<8x1xf32>
      %cst_34 = arith.constant 3.200000e+01 : f32
      %36 = vector.broadcast %cst_34 : f32 to vector<8x1xf32>
      %37 = arith.divf %35, %36 : vector<8x1xf32>
      %38 = vector.broadcast %37 : vector<8x1xf32> to vector<8x32xf32>
      %39 = arith.subf %30, %38 : vector<8x32xf32>
      %40 = arith.mulf %39, %39 : vector<8x32xf32>
      %cst_35 = arith.constant dense<0.000000e+00> : vector<8xf32>
      %41 = vector.multi_reduction <add>, %40, %cst_35 [1] : vector<8x32xf32> to vector<8xf32>
      %42 = vector.shape_cast %41 : vector<8xf32> to vector<8x1xf32>
      %cst_36 = arith.constant 3.200000e+01 : f32
      %43 = vector.broadcast %cst_36 : f32 to vector<8x1xf32>
      %44 = arith.divf %42, %43 : vector<8x1xf32>
      %cst_37 = arith.constant 9.99999997E-7 : f32
      %45 = vector.broadcast %cst_37 : f32 to vector<8x1xf32>
      %46 = arith.addf %44, %45 : vector<8x1xf32>
      %47 = math.rsqrt %46 : vector<8x1xf32>
      %48 = vector.broadcast %47 : vector<8x1xf32> to vector<8x32xf32>
      %49 = arith.mulf %39, %48 : vector<8x32xf32>
      %50 = vector.broadcast %32 : vector<1x32xf32> to vector<8x32xf32>
      %51 = arith.mulf %49, %50 : vector<8x32xf32>
      %52 = vector.broadcast %33 : vector<1x32xf32> to vector<8x32xf32>
      %53 = arith.addf %51, %52 : vector<8x32xf32>
      %54 = arith.truncf %53 : vector<8x32xf32> to vector<8x32xbf16>
      %c0_38 = arith.constant 0 : index
      %c0_39 = arith.constant 0 : index
      %55 = vector.load %arg17[%c0_38, %c0_39] : memref<8x32xbf16, #tpu.memory_space<vmem>>, vector<8x32xbf16>
      tpu.vector_store %arg17[%c0_38, %c0_39], %54 {strides = array<i32>} : memref<8x32xbf16, #tpu.memory_space<vmem>>, vector<8x32xbf16>,
      %cst_40 = arith.constant 0.000000e+00 : f32
      %56 = vector.broadcast %cst_40 : f32 to vector<8x32xf32>
      %c0_41 = arith.constant 0 : index
      %c0_42 = arith.constant 0 : index
      %57 = vector.load %arg18[%c0_41, %c0_42] : memref<8x32xf32, #tpu.memory_space<vmem>>, vector<8x32xf32>
      tpu.vector_store %arg18[%c0_41, %c0_42], %56 {strides = array<i32>} : memref<8x32xf32, #tpu.memory_space<vmem>>, vector<8x32xf32>,
    } else {
    }
    %c0 = arith.constant 0 : index
    %c0_1 = arith.constant 0 : index
    %3 = vector.load %arg17[%c0, %c0_1] : memref<8x32xbf16, #tpu.memory_space<vmem>>, vector<8x32xbf16>
    %c0_2 = arith.constant 0 : index
    %c0_3 = arith.constant 0 : index
    %4 = vector.load %arg9[%c0_2, %c0_3] : memref<32x64xbf16, #tpu.memory_space<vmem>>, vector<32x64xbf16>
    %cst = arith.constant dense<0.000000e+00> : vector<8x64xf32>
    %5 = tpu.matmul %3, %4, %cst {dimension_numbers = #tpu.dot_dimension_numbers<[1], [0], [0], [1], [0, 0, 1, 1], [], []>} : vector<8x32xbf16>, vector<32x64xbf16>, vector<8x64xf32> -> vector<8x64xf32>
    %c0_4 = arith.constant 0 : index
    %c0_5 = arith.constant 0 : index
    %6 = vector.load %arg10[%c0_4, %c0_5] : memref<1x64xf32, #tpu.memory_space<vmem>>, vector<1x64xf32>
    %7 = vector.broadcast %6 : vector<1x64xf32> to vector<8x64xf32>
    %8 = arith.addf %5, %7 : vector<8x64xf32>
    %cst_6 = arith.constant 0.000000e+00 : f32
    %9 = vector.broadcast %cst_6 : f32 to vector<8x64xf32>
    %10 = arith.maximumf %8, %9 : vector<8x64xf32>
    %c0_7 = arith.constant 0 : index
    %c0_8 = arith.constant 0 : index
    %11 = vector.load %arg18[%c0_7, %c0_8] : memref<8x32xf32, #tpu.memory_space<vmem>>, vector<8x32xf32>
    %12 = arith.truncf %10 : vector<8x64xf32> to vector<8x64xbf16>
    %c0_9 = arith.constant 0 : index
    %c0_10 = arith.constant 0 : index
    %13 = vector.load %arg11[%c0_9, %c0_10] : memref<64x32xbf16, #tpu.memory_space<vmem>>, vector<64x32xbf16>
    %cst_11 = arith.constant dense<0.000000e+00> : vector<8x32xf32>
    %14 = tpu.matmul %12, %13, %cst_11 {dimension_numbers = #tpu.dot_dimension_numbers<[1], [0], [0], [1], [0, 0, 1, 1], [], []>} : vector<8x64xbf16>, vector<64x32xbf16>, vector<8x32xf32> -> vector<8x32xf32>
    %15 = arith.addf %11, %14 : vector<8x32xf32>
    %c0_12 = arith.constant 0 : index
    %c0_13 = arith.constant 0 : index
    %16 = vector.load %arg18[%c0_12, %c0_13] : memref<8x32xf32, #tpu.memory_space<vmem>>, vector<8x32xf32>
    tpu.vector_store %arg18[%c0_12, %c0_13], %15 {strides = array<i32>} : memref<8x32xf32, #tpu.memory_space<vmem>>, vector<8x32xf32>,
    %c0_i32_14 = arith.constant 0 : i32
    %17 = arith.cmpi eq, %arg2, %c0_i32_14 : i32
    %18 = arith.extui %17 : i1 to i32
    %c0_i32_15 = arith.constant 0 : i32
    %19 = arith.cmpi ne, %18, %c0_i32_15 : i32
    scf.if %19 {
      %c0_16 = arith.constant 0 : index
      %c0_17 = arith.constant 0 : index
      %20 = vector.load %arg18[%c0_16, %c0_17] : memref<8x32xf32, #tpu.memory_space<vmem>>, vector<8x32xf32>
      %c0_18 = arith.constant 0 : index
      %c0_19 = arith.constant 0 : index
      %21 = vector.load %arg12[%c0_18, %c0_19] : memref<1x32xf32, #tpu.memory_space<vmem>>, vector<1x32xf32>
      %22 = vector.broadcast %21 : vector<1x32xf32> to vector<8x32xf32>
      %23 = arith.addf %20, %22 : vector<8x32xf32>
      %c0_20 = arith.constant 0 : index
      %c0_21 = arith.constant 0 : index
      %24 = vector.load %arg16[%c0_20, %c0_21] : memref<8x32xf32, #tpu.memory_space<vmem>>, vector<8x32xf32>
      %25 = arith.addf %23, %24 : vector<8x32xf32>
      %c0_22 = arith.constant 0 : index
      %c0_23 = arith.constant 0 : index
      %26 = vector.load %arg13[%c0_22, %c0_23] : memref<1x32xf32, #tpu.memory_space<vmem>>, vector<1x32xf32>
      %c0_24 = arith.constant 0 : index
      %c0_25 = arith.constant 0 : index
      %27 = vector.load %arg14[%c0_24, %c0_25] : memref<1x32xf32, #tpu.memory_space<vmem>>, vector<1x32xf32>
      %cst_26 = arith.constant dense<0.000000e+00> : vector<8xf32>
      %28 = vector.multi_reduction <add>, %25, %cst_26 [1] : vector<8x32xf32> to vector<8xf32>
      %29 = vector.shape_cast %28 : vector<8xf32> to vector<8x1xf32>
      %cst_27 = arith.constant 3.200000e+01 : f32
      %30 = vector.broadcast %cst_27 : f32 to vector<8x1xf32>
      %31 = arith.divf %29, %30 : vector<8x1xf32>
      %32 = vector.broadcast %31 : vector<8x1xf32> to vector<8x32xf32>
      %33 = arith.subf %25, %32 : vector<8x32xf32>
      %34 = arith.mulf %33, %33 : vector<8x32xf32>
      %cst_28 = arith.constant dense<0.000000e+00> : vector<8xf32>
      %35 = vector.multi_reduction <add>, %34, %cst_28 [1] : vector<8x32xf32> to vector<8xf32>
      %36 = vector.shape_cast %35 : vector<8xf32> to vector<8x1xf32>
      %cst_29 = arith.constant 3.200000e+01 : f32
      %37 = vector.broadcast %cst_29 : f32 to vector<8x1xf32>
      %38 = arith.divf %36, %37 : vector<8x1xf32>
      %cst_30 = arith.constant 9.99999997E-7 : f32
      %39 = vector.broadcast %cst_30 : f32 to vector<8x1xf32>
      %40 = arith.addf %38, %39 : vector<8x1xf32>
      %41 = math.rsqrt %40 : vector<8x1xf32>
      %42 = vector.broadcast %41 : vector<8x1xf32> to vector<8x32xf32>
      %43 = arith.mulf %33, %42 : vector<8x32xf32>
      %44 = vector.broadcast %26 : vector<1x32xf32> to vector<8x32xf32>
      %45 = arith.mulf %43, %44 : vector<8x32xf32>
      %46 = vector.broadcast %27 : vector<1x32xf32> to vector<8x32xf32>
      %47 = arith.addf %45, %46 : vector<8x32xf32>
      %c0_31 = arith.constant 0 : index
      %c0_32 = arith.constant 0 : index
      %c0_33 = arith.constant 0 : index
      %48 = vector.load %arg15[%c0_31, %c0_32, %c0_33] : memref<1x8x32xf32, #tpu.memory_space<vmem>>, vector<1x8x32xf32>
      %49 = vector.shape_cast %48 : vector<1x8x32xf32> to vector<8x32xf32>
      %50 = vector.shape_cast %47 : vector<8x32xf32> to vector<1x8x32xf32>
      tpu.vector_store %arg15[%c0_31, %c0_32, %c0_33], %50 {strides = array<i32>} : memref<1x8x32xf32, #tpu.memory_space<vmem>>, vector<1x8x32xf32>,
    } else {
    }
    return
  }
  func.func @transform_0(%arg0: i32, %arg1: i32, %arg2: i32) -> (i32, i32, i32) {
    %c0_i32 = arith.constant 0 : i32
    %c0_i32_0 = arith.constant 0 : i32
    return %arg0, %arg1, %c0_i32 : i32, i32, i32
  }
  func.func @transform_1(%arg0: i32, %arg1: i32, %arg2: i32) -> (i32, i32, i32) {
    %c0_i32 = arith.constant 0 : i32
    %c0_i32_0 = arith.constant 0 : i32
    return %arg0, %arg1, %c0_i32 : i32, i32, i32
  }
  func.func @transform_2(%arg0: i32, %arg1: i32, %arg2: i32) -> (i32, i32) {
    %c0_i32 = arith.constant 0 : i32
    %c0_i32_0 = arith.constant 0 : i32
    %c0_i32_1 = arith.constant 0 : i32
    return %c0_i32, %c0_i32_0 : i32, i32
  }
  func.func @transform_3(%arg0: i32, %arg1: i32, %arg2: i32) -> (i32, i32) {
    %c0_i32 = arith.constant 0 : i32
    %c0_i32_0 = arith.constant 0 : i32
    %c0_i32_1 = arith.constant 0 : i32
    return %c0_i32, %c0_i32_0 : i32, i32
  }
  func.func @transform_4(%arg0: i32, %arg1: i32, %arg2: i32) -> (i32, i32) {
    %c0_i32 = arith.constant 0 : i32
    %c0_i32_0 = arith.constant 0 : i32
    %c0_i32_1 = arith.constant 0 : i32
    return %c0_i32, %c0_i32_0 : i32, i32
  }
  func.func @transform_5(%arg0: i32, %arg1: i32, %arg2: i32) -> (i32, i32) {
    %c0_i32 = arith.constant 0 : i32
    %c0_i32_0 = arith.constant 0 : i32
    %c0_i32_1 = arith.constant 0 : i32
    return %c0_i32, %c0_i32_0 : i32, i32
  }
  func.func @transform_6(%arg0: i32, %arg1: i32, %arg2: i32) -> (i32, i32) {
    %c0_i32 = arith.constant 0 : i32
    %c0_i32_0 = arith.constant 0 : i32
    return %c0_i32, %arg2 : i32, i32
  }
  func.func @transform_7(%arg0: i32, %arg1: i32, %arg2: i32) -> (i32, i32) {
    %c0_i32 = arith.constant 0 : i32
    %c0_i32_0 = arith.constant 0 : i32
    return %c0_i32, %arg2 : i32, i32
  }
  func.func @transform_8(%arg0: i32, %arg1: i32, %arg2: i32) -> (i32, i32) {
    %c0_i32 = arith.constant 0 : i32
    %c0_i32_0 = arith.constant 0 : i32
    return %arg2, %c0_i32 : i32, i32
  }
  func.func @transform_9(%arg0: i32, %arg1: i32, %arg2: i32) -> (i32, i32) {
    %c0_i32 = arith.constant 0 : i32
    %c0_i32_0 = arith.constant 0 : i32
    %c0_i32_1 = arith.constant 0 : i32
    return %c0_i32, %c0_i32_0 : i32, i32
  }
  func.func @transform_10(%arg0: i32, %arg1: i32, %arg2: i32) -> (i32, i32) {
    %c0_i32 = arith.constant 0 : i32
    %c0_i32_0 = arith.constant 0 : i32
    %c0_i32_1 = arith.constant 0 : i32
    return %c0_i32, %c0_i32_0 : i32, i32
  }
  func.func @transform_11(%arg0: i32, %arg1: i32, %arg2: i32) -> (i32, i32) {
    %c0_i32 = arith.constant 0 : i32
    %c0_i32_0 = arith.constant 0 : i32
    %c0_i32_1 = arith.constant 0 : i32
    return %c0_i32, %c0_i32_0 : i32, i32
  }
  func.func @transform_12(%arg0: i32, %arg1: i32, %arg2: i32) -> (i32, i32, i32) {
    %c0_i32 = arith.constant 0 : i32
    %c0_i32_0 = arith.constant 0 : i32
    return %arg0, %arg1, %c0_i32 : i32, i32, i32
  }
}

</mosaic_0001>

<bundles_post_ra>
// kernel: transformer_encoder_forward.6
= control target key start
LH: loop header
LB: loop body
LE: loop exit
PB: predicated region body
PF: predicated region fallthrough
CT: control target
= control target key end

     0   :  { %s818_s24 = smov 0   ;;  %s820_s25 = smov 0   ;;  %s902_s0 = inlined_call_operand.vmem [shape: bf16[2,8,32], index: 0, kind: input, shape index: {}]   ;;  %s903_s1 = inlined_call_operand.vmem [shape: f32[1,32], index: 1, kind: input, shape index: {}]   ;;  %s904_s2 = inlined_call_operand.vmem [shape: f32[1,32], index: 2, kind: input, shape index: {}]   ;;  %s905_s3 = inlined_call_operand.vmem [shape: bf16[32,96], index: 3, kind: input, shape index: {}]   ;;  %s906_s4 = inlined_call_operand.vmem [shape: f32[1,96], index: 4, kind: input, shape index: {}]   ;;  %s907_s5 = inlined_call_operand.vmem [shape: bf16[2,4,8,8], index: 5, kind: output, shape index: {0}]   ;;  %s908_s6 = inlined_call_operand.vmem [shape: bf16[2,4,8,8], index: 6, kind: output, shape index: {1}]   ;;  %s909_s7 = inlined_call_operand.vmem [shape: bf16[2,4,8,8], index: 7, kind: output, shape index: {2}]  }
   0x1   :  { %s822_s26 = smov 0  }
   0x2 LB: > { %s30_s27 = sadd.s32 1, %s760_s25  ;;  %p666_p0 = scmp.ge.s32.totalorder %s764_s26, 1  ;;  %s764_s26 = sphi %s822_s26, %s18_s26   ;;  %s760_s25 = sphi %s820_s25, %s911_s25   ;;  %s756_s24 = sphi %s818_s24, %s910_s24  }
   0x3   : > { %p32_p1 = scmp.ge.s32.totalorder %s30_s27, 2  ;;  %p264_p2 = scmp.lt.s32.totalorder %s764_s26, 3 }
   0x5   : > { %s913_s27 = smov (%p32_p1, %s30_s27), 0  ;;  %p265_p3 = pnand %p666_p0, %p264_p2 }
   0x6   : > { %p317_p4 = scmp.lt.s32.totalorder (!%p265_p3), %s756_s24, 1  ;;  %s767_s23 = smov (!%p265_p3), 56  }
   0x7   : > { %268 = sbr.rel (%p265_p3) target bundleno = 567 (0x237), region = 40  ;;  %s769_s29 = smov (!%p265_p3), 96  }
   0x8   : > { %s771_s30 = smov (!%p265_p3), 64   ;;  %s773_s9 = smov (!%p265_p3), 48  }
   0x9   : > { %s774_s10 = smov (!%p265_p3), 104   ;;  %s775_s11 = smov (!%p265_p3), 112  }
   0xa   : > { %s776_s12 = smov (!%p265_p3), 40   ;;  %s777_s13 = smov (!%p265_p3), 72  }
   0xc   : > { %s915_s24 = smov (!%p317_p4, %s756_s24), 1  ;;  %vm353_vm0 = vcmask 261120   ;;  %v766_v3 = vmov 32.0   ;;  %v698_v15 = vld [vmem:[%s905_s3 + $0x8] sm:$0xff]  ;;  %v697_v16 = vld [vmem:[%s905_s3] sm:$0xff]  ;;  %vm430_vm5 = vcmask 60416  }
   0xd   : > { %s667_s28 = sshll.u32 %s915_s24, 2  ;;  %738 = vrcp.f32 %v766_v3  ;;  %421 = vmatpush.bf16.msra.mxu0 %v698_v15  ;;  %v735_v26 = vld [vmem:[%s903_s1] ss:$0 sm:$0xff]  ;;  %s861_s19 = sshll.u32 %s915_s24, 4 }
   0xe   : > { %s323_s8 = scalar_lea.vmem %s902_s0, %s667_s28  ;;  %v736_v29 = vld [vmem:[%s904_s2] ss:$0 sm:$0xff]  ;;  %s867_s22 = scalar_lea.vmem %s907_s5, %s861_s19 }
   0xf   : > { %v349_v0 = vld [vmem:[%s323_s8] sm:$0xf]  ;;  %s768_s28 = smov 88   ;;  %s770_s24 = smov 80  }
  0x10   : > { %v350_v1 = vunpack.c.l.bf16 %v349_v0  ;;  %v737_v33 = vld [vmem:[%s906_s4] ss:$0 sm:$0xff]  ;;  %s772_s8 = smov 120   ;;  %s339_s16 = scalar_lea.vmem %s908_s6, %s861_s19 }
  0x11   : > { %422 = vmatpush.bf16.msra.mxu0 %v697_v16  ;;  %s347_s20 = scalar_lea.vmem %s909_s7, %s861_s19 }
  0x12   : > { %v354_v2 = vsel %vm353_vm0, %v350_v1, 0.0 }
  0x13   : > { %355 = vadd.xlane.f32.xlu0 %v354_v2  ;;  %v739_v4 = vpop.eup %738 }
  0x14   : > { %v358_v5 = vmul.f32 32.0, %v739_v4  ;;  %vm362_vm1 = vweird.f32 %v739_v4 }
  0x16   : > { %v359_v6 = vsub.f32 1.0, %v358_v5 }
  0x18   : > { %v360_v7 = vmul.f32 %v739_v4, %v359_v6 }
  0x1a   : > { %v361_v8 = vadd.f32 %v739_v4, %v360_v7 }
  0x1c   : > { %v363_v9 = vsel %vm362_vm1, %v739_v4, %v361_v8 }
  0x86   : > { %v356_v10 = vpop.xlane.xlu0 %355 }
  0x87   : > { %v364_v11 = vmul.f32 %v363_v9, %v356_v10 }
  0x89   : > { %v365_v12 = vsub.f32 %v350_v1, %v364_v11 }
  0x8b   : > { %v366_v13 = vmul.f32 %v365_v12, %v365_v12 }
  0x8d   : > { %v367_v14 = vsel %vm353_vm0, %v366_v13, 0.0 }
  0x8e   : > { %368 = vadd.xlane.f32.xlu0 %v367_v14 }
 0x101   : > { %v369_v17 = vpop.xlane.xlu0 %368 }
 0x102   : > { %v370_v18 = vmul.f32 %v369_v17, %v363_v9 }
 0x104   : > { %v371_v19 = vadd.f32 1e-06, %v370_v18 }
 0x106   : > { %740 = vrsqrt.f32 %v371_v19  ;;  %vm378_vm3 = vweird.f32 %v371_v19 }
 0x10c   : > { %v741_v20 = vpop.eup %740 }
 0x10d   : > { %v373_v21 = vmul.f32 %v741_v20, %v371_v19  ;;  %vm379_vm2 = vweird.f32 %v741_v20 }
 0x10e   : > { %vm380_vm4 = vmor %vm378_vm3, %vm379_vm2 }
 0x10f   : > { %v374_v22 = vmul.f32 %v741_v20, %v373_v21 }
 0x111   : > { %v375_v23 = vmul.f32 0.5, %v374_v22 }
 0x113   : > { %v376_v24 = vsub.f32 1.5, %v375_v23 }
 0x115   : > { %v377_v25 = vmul.f32 %v741_v20, %v376_v24 }
 0x117   : > { %v381_v27 = vsel %vm380_vm4, %v741_v20, %v377_v25 }
 0x118   : > { %v382_v28 = vmul.f32 %v381_v27, %v365_v12 }
 0x11a   : > { %v386_v30 = vmul.f32 %v735_v26, %v382_v28 }
 0x11c   : > { %v390_v31 = vadd.f32 %v736_v29, %v386_v30 }
 0x11e   : > { %v391_v32 = vpack.c.bf16 %v390_v31, %v390_v31 }
 0x120   : > { %682 = vmatmul.msk.bf16.vlgmr.msra.gmra.mxu0 %vm353_vm0, %v391_v32 }
 0x19d   : > { %v424_v34 = vpop.f32.mrf.mxu0 }
 0x19e   : > { %v425_v35 = vadd.f32 %v737_v33, %v424_v34 }
 0x1a0   : > { %v428_v36 = vmul.f32 0.5100697, %v425_v35  ;;  %v432_v37 = vpack.c.bf16 %v425_v35, %v425_v35 }
 0x1a2   : > { %v429_v38 = vpack.c.bf16 %v428_v36, %v428_v36  ;;  %453 = vrot.lane.b32.xlu0 %v432_v37, %s767_s23  ;;  %448 = vrot.lane.b32.xlu2 %v432_v37, %s768_s28 }
 0x1a3   : > { %434 = vrot.lane.b32.xlu1 %v432_v37, %s769_s29 }
 0x1a4   : > { %431 = vst.msk [vmem:[%s867_s22] sm:$0xf] %vm430_vm5, %v429_v38 }
 0x1a5   : > { %v426_v39 = vpop.f32.mrf.mxu0 }
 0x1aa   : > { %463 = vrot.lane.b32.xlu2 %v432_v37, %s770_s24 }
 0x1ab   : > { %438 = vrot.lane.b32.xlu1 %v432_v37, %s771_s30 }
 0x1b2   : > { %443 = vrot.lane.b32.xlu2 %v429_v38, %s772_s8 }
 0x1b3   : > { %468 = vrot.lane.b32.xlu1 %v432_v37, %s773_s9 }
 0x1ba   : > { %473 = vrot.lane.b32.xlu2 %v429_v38, %s774_s10 }
 0x1bb   : > { %458 = vrot.lane.b32.xlu1 %v429_v38, %s775_s11 }
 0x1c2   : > { %483 = vrot.lane.b32.xlu2 %v432_v37, %s776_s12 }
 0x1c3   : > { %478 = vrot.lane.b32.xlu1 %v432_v37, %s777_s13 }
 0x1fc   : > { %v449_v40 = vpop.permute.xlu2 %448 }
 0x1fd   : > { %684 = vst.msk [vmem:[%s339_s16 + $0x4] sm:$0xf] %vm430_vm5, %v449_v40 }
 0x204   : > { %v464_v41 = vpop.permute.xlu2 %463 }
 0x205   : > { %687 = vst.msk [vmem:[%s339_s16 + $0x8] sm:$0xf] %vm430_vm5, %v464_v41 }
 0x20c   : > { %v444_v42 = vpop.permute.xlu2 %443 }
 0x20d   : > { %683 = vst.msk [vmem:[%s867_s22 + $0x4] sm:$0xf] %vm430_vm5, %v444_v42 }
 0x214   : > { %v454_v43 = vpop.permute.xlu0 %453  ;;  %v474_v44 = vpop.permute.xlu2 %473 }
 0x215   : > { %685 = vst.msk [vmem:[%s347_s20 + $0x4] sm:$0xf] %vm430_vm5, %v454_v43  ;;  %v435_v45 = vpop.permute.xlu1 %434 }
 0x216   : > { %437 = vst.msk [vmem:[%s339_s16] sm:$0xf] %vm430_vm5, %v435_v45 }
 0x217   : > { %689 = vst.msk [vmem:[%s867_s22 + $0xc] sm:$0xf] %vm430_vm5, %v474_v44 }
 0x21c   : > { %v484_v46 = vpop.permute.xlu2 %483 }
 0x21d   : > { %v439_v47 = vpop.permute.xlu1 %438  ;;  %691 = vst.msk [vmem:[%s347_s20 + $0xc] sm:$0xf] %vm430_vm5, %v484_v46 }
 0x21e   : > { %441 = vst.msk [vmem:[%s347_s20] sm:$0xf] %vm430_vm5, %v439_v47 }
 0x225   : > { %v469_v48 = vpop.permute.xlu1 %468 }
 0x226   : > { %688 = vst.msk [vmem:[%s347_s20 + $0x8] sm:$0xf] %vm430_vm5, %v469_v48 }
 0x22d   : > { %v459_v49 = vpop.permute.xlu1 %458 }
 0x22e   : > { %686 = vst.msk [vmem:[%s867_s22 + $0x8] sm:$0xf] %vm430_vm5, %v459_v49 }
 0x235   : > { %v479_v50 = vpop.permute.xlu1 %478 }
 0x236   : > { %690 = vst.msk [vmem:[%s339_s16 + $0xc] sm:$0xf] %vm430_vm5, %v479_v50 }
 0x237 PF: > { %s18_s26 = sadd.s32 1, %s764_s26   ;;  %s910_s24 = smov %s760_s25 }
 0x238   : > { %p15_p5 = scmp.ge.s32.totalorder %s18_s26, 4   ;;  %s911_s25 = smov %s913_s27 }
 0x23a   :  { %17 = sbr.rel (!%p15_p5) target bundleno = 2 (0x2), region = 103 }

// kernel: transformer_encoder_forward.8
= control target key start
LH: loop header
LB: loop body
LE: loop exit
PB: predicated region body
PF: predicated region fallthrough
CT: control target
= control target key end

     0   :  { %s1041_s21 = smov 0   ;;  %s1043_s22 = smov 0   ;;  %s1130_s0 = inlined_call_operand.vmem [shape: bf16[2,8,32], index: 0, kind: input, shape index: {}]   ;;  %s1131_s1 = inlined_call_operand.vmem [shape: bf16[2,8,32], index: 1, kind: input, shape index: {}]   ;;  %s1132_s2 = inlined_call_operand.vmem [shape: bf16[32,32], index: 2, kind: input, shape index: {}]   ;;  %s1133_s3 = inlined_call_operand.vmem [shape: f32[1,32], index: 3, kind: input, shape index: {}]   ;;  %s1134_s4 = inlined_call_operand.vmem [shape: f32[1,32], index: 4, kind: input, shape index: {}]   ;;  %s1135_s5 = inlined_call_operand.vmem [shape: f32[1,32], index: 5, kind: input, shape index: {}]   ;;  %s1136_s6 = inlined_call_operand.vmem [shape: bf16[32,64], index: 6, kind: input, shape index: {}]   ;;  %s1137_s7 = inlined_call_operand.vmem [shape: f32[1,64], index: 7, kind: input, shape index: {}]   ;;  %s1138_s8 = inlined_call_operand.vmem [shape: bf16[64,32], index: 8, kind: input, shape index: {}]   ;;  %s1139_s9 = inlined_call_operand.vmem [shape: f32[1,32], index: 9, kind: input, shape index: {}]   ;;  %s1140_s10 = inlined_call_operand.vmem [shape: f32[1,32], index: 10, kind: input, shape index: {}]   ;;  %s1141_s11 = inlined_call_operand.vmem [shape: f32[1,32], index: 11, kind: input, shape index: {}]   ;;  %s1142_s12 = inlined_call_operand.vmem [shape: bf16[2,8,32], index: 12, kind: output, shape index: {}]  }
   0x1   :  { %s1045_s23 = smov 0  }
   0x2 LB: > { %s41_s10 = sadd.s32 1, %s968_s22  ;;  %p866_p0 = scmp.ge.s32.totalorder %s972_s23, 1  ;;  %s972_s23 = sphi %s1045_s23, %s22_s23   ;;  %s968_s22 = sphi %s1043_s22, %s1144_s22   ;;  %s964_s21 = sphi %s1041_s21, %s1143_s21  }
   0x3   : > { %p43_p1 = scmp.ge.s32.totalorder %s41_s10, 2  ;;  %p429_p2 = scmp.lt.s32.totalorder %s972_s23, 3 }
   0x5   : > { %s1146_s10 = smov (%p43_p1, %s41_s10), 0  ;;  %p430_p3 = pnand %p866_p0, %p429_p2 }
   0x6   : > { %p494_p4 = scmp.lt.s32.totalorder (!%p430_p3), %s964_s21, 1 }
   0x7   : > { %433 = sbr.rel (%p430_p3) target bundleno = 709 (0x2c5), region = 68 }
   0xc   : > { %v908_v0 = vld [vmem:[%s1132_s2 + $0x8] sm:$0xff]  ;;  %v907_v1 = vld [vmem:[%s1132_s2] sm:$0xff]  ;;  %s1148_s21 = smov (!%p494_p4, %s964_s21), 1  ;;  %vm554_vm0 = vcmask 261120   ;;  %v974_v11 = vmov 32.0   ;;  %v914_v28 = vld [vmem:[%s1138_s8 + $0x18] sm:$0xff] }
   0xd   : > { %564 = vmatpush.bf16.msra.mxu0 %v908_v0  ;;  %s1065_s27 = sshll.u32 %s1148_s21, 2  ;;  %v941_v4 = vld [vmem:[%s1133_s3] ss:$0 sm:$0xff]  ;;  %946 = vrcp.f32 %v974_v11  ;;  %v910_v23 = vld [vmem:[%s1136_s6 + $0x8] sm:$0xff]  ;;  %699 = vmatpush.bf16.msra.mxu2 %v914_v28  ;;  %v913_v29 = vld [vmem:[%s1138_s8 + $0x10] sm:$0xff]  ;;  %vm615_vm5 = vcmask 257024  }
   0xe   : > { %s500_s30 = scalar_lea.vmem %s1130_s0, %s1065_s27  ;;  %s507_s15 = scalar_lea.vmem %s1131_s1, %s1065_s27  ;;  %649 = vmatpush.bf16.msra.mxu1 %v910_v23  ;;  %v909_v25 = vld [vmem:[%s1136_s6] sm:$0xff]  ;;  %v912_v44 = vld [vmem:[%s1138_s8 + $0x8] sm:$0xff]  ;;  %v975_v46 = vmov 0.0   ;;  %vm691_vm6 = vcmask 523264  }
   0xf   : > { %v533_v2 = vld [vmem:[%s500_s30] sm:$0xf]  ;;  %617 = vst.msk [vmem:[#allocation4] sm:$0xff] %vm554_vm0, %v975_v46  ;;  %s527_s25 = scalar_lea.vmem %s1142_s12, %s1065_s27 }
  0x10   : > { %v571_v3 = vld [vmem:[%s507_s15] sm:$0xf] }
  0x11   : > { %565 = vmatpush.bf16.msra.mxu0 %v907_v1  ;;  %v572_v5 = vunpack.c.l.bf16 %v571_v3  ;;  %700 = vmatpush.bf16.msra.mxu2 %v913_v29  ;;  %v942_v36 = vld [vmem:[%s1134_s4] ss:$0 sm:$0xff] }
  0x12   : > { %650 = vmatpush.bf16.msra.mxu1 %v909_v25  ;;  %v943_v38 = vld [vmem:[%s1135_s5] ss:$0 sm:$0xff] }
  0x13   : > { %v947_v12 = vpop.eup %946  ;;  %v911_v45 = vld [vmem:[%s1138_s8] sm:$0xff] }
  0x14   : > { %878 = vmatmul.msk.bf16.vlgmr.msra.gmra.mxu0 %vm554_vm0, %v533_v2  ;;  %v581_v13 = vmul.f32 32.0, %v947_v12  ;;  %vm585_vm1 = vweird.f32 %v947_v12  ;;  %v944_v47 = vld [vmem:[%s1137_s7] ss:$0 sm:$0xff] }
  0x15   : > { %701 = vmatpush.bf16.msra.mxu2 %v912_v44  ;;  %v945_v56 = vld [vmem:[%s1139_s9] ss:$0 sm:$0xff] }
  0x16   : > { %v582_v14 = vsub.f32 1.0, %v581_v13  ;;  %v657_v53 = vld [vmem:[#allocation4] sm:$0xff] }
  0x18   : > { %v583_v15 = vmul.f32 %v947_v12, %v582_v14 }
  0x19   : > { %702 = vmatpush.bf16.msra.mxu2 %v911_v45 }
  0x1a   : > { %v584_v16 = vadd.f32 %v947_v12, %v583_v15 }
  0x1c   : > { %v586_v17 = vsel %vm585_vm1, %v947_v12, %v584_v16 }
  0x91   : > { %v567_v6 = vpop.f32.mrf.mxu0 }
  0x92   : > { %v568_v7 = vadd.f32 %v941_v4, %v567_v6 }
  0x94   : > { %v573_v8 = vadd.f32 %v572_v5, %v568_v7 }
  0x96   : > { %574 = vst.msk [vmem:[#allocation2] sm:$0xff] %vm554_vm0, %v573_v8  ;;  %v577_v9 = vsel %vm554_vm0, %v573_v8, 0.0 }
  0x97   : > { %578 = vadd.xlane.f32.xlu0 %v577_v9 }
  0x99   : > { %v569_v10 = vpop.f32.mrf.mxu0 }
  0x9d   : > { %v719_v60 = vld [vmem:[#allocation2] sm:$0xff] }
 0x10a   : > { %v579_v18 = vpop.xlane.xlu0 %578 }
 0x10b   : > { %v587_v19 = vmul.f32 %v586_v17, %v579_v18 }
 0x10d   : > { %v588_v20 = vsub.f32 %v573_v8, %v587_v19 }
 0x10f   : > { %v589_v21 = vmul.f32 %v588_v20, %v588_v20 }
 0x111   : > { %v590_v22 = vsel %vm554_vm0, %v589_v21, 0.0 }
 0x112   : > { %591 = vadd.xlane.f32.xlu0 %v590_v22 }
 0x185   : > { %v592_v24 = vpop.xlane.xlu0 %591 }
 0x186   : > { %v593_v26 = vmul.f32 %v592_v24, %v586_v17 }
 0x188   : > { %v594_v27 = vadd.f32 1e-06, %v593_v26 }
 0x18a   : > { %948 = vrsqrt.f32 %v594_v27  ;;  %vm601_vm3 = vweird.f32 %v594_v27 }
 0x190   : > { %v949_v30 = vpop.eup %948 }
 0x191   : > { %v596_v31 = vmul.f32 %v949_v30, %v594_v27  ;;  %vm602_vm2 = vweird.f32 %v949_v30 }
 0x192   : > { %vm603_vm4 = vmor %vm601_vm3, %vm602_vm2 }
 0x193   : > { %v597_v32 = vmul.f32 %v949_v30, %v596_v31 }
 0x195   : > { %v598_v33 = vmul.f32 0.5, %v597_v32 }
 0x197   : > { %v599_v34 = vsub.f32 1.5, %v598_v33 }
 0x199   : > { %v600_v35 = vmul.f32 %v949_v30, %v599_v34 }
 0x19b   : > { %v604_v37 = vsel %vm603_vm4, %v949_v30, %v600_v35 }
 0x19c   : > { %v605_v39 = vmul.f32 %v604_v37, %v588_v20 }
 0x19e   : > { %v609_v40 = vmul.f32 %v942_v36, %v605_v39 }
 0x1a0   : > { %v613_v41 = vadd.f32 %v943_v38, %v609_v40 }
 0x1a2   : > { %v614_v42 = vpack.c.bf16 %v613_v41, %v613_v41 }
 0x1a4   : > { %616 = vst.msk [vmem:[#allocation3] sm:$0xf] %vm615_vm5, %v614_v42 }
 0x1ab   : > { %v618_v43 = vld [vmem:[#allocation3] sm:$0xf] }
 0x1ac   : > { %887 = vmatmul.msk.bf16.vlgmr.msra.gmra.mxu1 %vm554_vm0, %v618_v43 }
 0x229   : > { %v652_v48 = vpop.f32.mrf.mxu1 }
 0x22a   : > { %v653_v49 = vadd.f32 %v944_v47, %v652_v48 }
 0x22c   : > { %v656_v50 = vmax.f32 %v653_v49, 0.0 }
 0x22e   : > { %v658_v51 = vpack.c.bf16 %v656_v50, %v656_v50 }
 0x230   : > { %904 = vmatmul.msk.bf16.vlgmr.msra.gmra.mxu2 %vm691_vm6, %v658_v51 }
 0x231   : > { %v654_v52 = vpop.f32.mrf.mxu1 }
 0x2b3   : > { %v704_v54 = vpop.f32.mrf.mxu2 }
 0x2b4   : > { %v708_v55 = vadd.f32 %v704_v54, %v657_v53 }
 0x2b6   : > { %709 = vst.msk [vmem:[#allocation4] sm:$0xff] %vm554_vm0, %v708_v55 }
 0x2bb   : > { %v706_v57 = vpop.f32.mrf.mxu2 }
 0x2bd   : > { %v713_v58 = vld [vmem:[#allocation4] sm:$0xff] }
 0x2be   : > { %v718_v59 = vadd.f32 %v945_v56, %v713_v58 }
 0x2c0   : > { %v720_v61 = vadd.f32 %v719_v60, %v718_v59 }
 0x2c2   : > { %v721_v62 = vpack.c.bf16 %v720_v61, %v720_v61 }
 0x2c4   : > { %723 = vst.msk [vmem:[%s527_s25] sm:$0xf] %vm615_vm5, %v721_v62 }
 0x2c5 PF: > { %s22_s23 = sadd.s32 1, %s972_s23   ;;  %s1143_s21 = smov %s968_s22 }
 0x2c6   : > { %p19_p5 = scmp.ge.s32.totalorder %s22_s23, 4   ;;  %s1144_s22 = smov %s1146_s10 }
 0x2c8   :  { %21 = sbr.rel (!%p19_p5) target bundleno = 2 (0x2), region = 118 }

// kernel: transformer_encoder_forward.7
= control target key start
LH: loop header
LB: loop body
LE: loop exit
PB: predicated region body
PF: predicated region fallthrough
CT: control target
= control target key end

     0   :  { %s1080_s21 = smov [#allocation6]   ;;  %s1265_s0 = inlined_call_operand.vmem [shape: s32[2], index: 0, kind: input, shape index: {}]   ;;  %s1266_s1 = inlined_call_operand.vmem [shape: f32[2,1,8], index: 1, kind: input, shape index: {}]   ;;  %s1267_s2 = inlined_call_operand.vmem [shape: bf16[2,4,8,8], index: 2, kind: input, shape index: {}]   ;;  %s1268_s3 = inlined_call_operand.vmem [shape: bf16[2,4,8,8], index: 3, kind: input, shape index: {}]   ;;  %s1269_s4 = inlined_call_operand.vmem [shape: bf16[2,4,8,8], index: 4, kind: input, shape index: {}]   ;;  %s1270_s5 = inlined_call_operand.vmem [shape: bf16[2,8,32], index: 5, kind: output, shape index: {}]  }
   0x1   :  { %s11_s20 = sshll.u32 %s1265_s0, 4  ;;  %s12_s20 = int_to_ptr.vmem [resolvable:$true] %s11_s20 }
   0x2   :  { %14 = dma.vmem_to_smem %s12_s20, 16, %s1080_s21, [#allocation5] }
   0x3   :  { %1066 = dma.done.wait [#allocation5], 16 }
   0x4   :  { %1067 = vsyncadd [#allocation5], 4294967280 }
   0x5   :  { %17 = sfence }
   0x6   :  { %s1121_s22 = smov 0   ;;  %s1123_s23 = smov 0  }
   0x7   :  { %s1125_s24 = smov 0  }
   0x8 LB: > { %s42_s0 = sadd.s32 1, %s1074_s23  ;;  %p944_p0 = scmp.ge.s32.totalorder %s1078_s24, 1  ;;  %s1078_s24 = sphi %s1125_s24, %s23_s24   ;;  %s1074_s23 = sphi %s1123_s23, %s1272_s23   ;;  %s1070_s22 = sphi %s1121_s22, %s1271_s22  }
   0x9   : > { %p44_p1 = scmp.ge.s32.totalorder %s42_s0, 2  ;;  %p288_p2 = scmp.lt.s32.totalorder %s1078_s24, 3 }
   0xb   : > { %s1274_s0 = smov (%p44_p1, %s42_s0), 0  ;;  %p289_p3 = pnand %p944_p0, %p288_p2 }
   0xc   : > { %s353_s25 = sld [smem:[#allocation6 + %s1070_s22]] (!%p289_p3)  ;;  %p357_p4 = scmp.lt.s32.totalorder (!%p289_p3), %s1070_s22, 1 }
   0xd   : > { %292 = sbr.rel (%p289_p3) target bundleno = 804 (0x324), region = 36  ;;  %s375_s26 = sld [smem:[#allocation6 + %s1070_s22]] (!%p289_p3) }
   0xe   : > { %s391_s28 = sld [smem:[#allocation6 + %s1070_s22]] (!%p289_p3) }
   0xf   : > { %s1161_s13 = sld [smem:[#allocation6 + %s1070_s22]] (!%p289_p3) }
  0x12   : > { %vm419_vm0 = vcmask 7168   ;;  %v1081_v0 = vmov -inf   ;;  %s1140_s27 = scalar_select %p357_p4, %s1070_s22, 1  ;;  %v1082_v1 = vmov 0.0   ;;  %vm428_vm1 = vcmask 64512  }
  0x13   : > { %420 = vst.msk [vmem:[#allocation2] sm:$0xff] %vm419_vm0, %v1081_v0  ;;  %s945_s12 = sadd.s32 4294967295, %s353_s25  ;;  %s952_s14 = sadd.s32 4294967295, %s375_s26 }
  0x14   : > { %421 = vst.msk [vmem:[#allocation2 + $0x8] sm:$0xff] %vm419_vm0, %v1081_v0  ;;  %s979_s29 = sshll.u32 %s1140_s27, 4  ;;  %s1146_s30 = sshll.u32 %s1140_s27, 2 }
  0x15   : > { %422 = vst.msk [vmem:[#allocation2 + $0x10] sm:$0xff] %vm419_vm0, %v1081_v0  ;;  %s1152_s8 = scalar_lea.vmem %s1267_s2, %s979_s29  ;;  %s1158_s11 = scalar_lea.vmem %s1270_s5, %s1146_s30 }
  0x16   : > { %423 = vst.msk [vmem:[#allocation2 + $0x18] sm:$0xff] %vm419_vm0, %v1081_v0  ;;  %p946_p5 = scmp.gt.s32.totalorder %s945_s12, 0  ;;  %p948_p6 = scmp.lt.s32.totalorder %s945_s12, 0 }
  0x17   : > { %424 = vst.msk [vmem:[#allocation3] sm:$0xff] %vm419_vm0, %v1082_v1  ;;  %p953_p7 = scmp.gt.s32.totalorder %s952_s14, 0  ;;  %p955_p8 = scmp.lt.s32.totalorder %s952_s14, 0 }
  0x18   : > { %425 = vst.msk [vmem:[#allocation3 + $0x8] sm:$0xff] %vm419_vm0, %v1082_v1  ;;  %s1276_s12 = smov (%p946_p5, %s945_s12), 0  ;;  %s959_s16 = sadd.s32 4294967295, %s391_s28 }
  0x19   : > { %426 = vst.msk [vmem:[#allocation3 + $0x10] sm:$0xff] %vm419_vm0, %v1082_v1  ;;  %s1278_s12 = smov (!%p948_p6, %s1276_s12), 0  ;;  %s1280_s14 = smov (%p953_p7, %s952_s14), 0 }
  0x1a   : > { %427 = vst.msk [vmem:[#allocation3 + $0x18] sm:$0xff] %vm419_vm0, %v1082_v1  ;;  %s361_s15 = sadd.s32 %s1278_s12, %s1140_s27  ;;  %p960_p9 = scmp.gt.s32.totalorder %s959_s16, 0 }
  0x1b   : > { %429 = vst.msk [vmem:[#allocation4] sm:$0xff] %vm428_vm1, %v1082_v1  ;;  %s1174_s19 = scalar_lea.vmem %s1266_s1, %s361_s15  ;;  %s1282_s14 = smov (!%p955_p8, %s1280_s14), 0 }
  0x1c   : > { %430 = vst.msk [vmem:[#allocation4 + $0x8] sm:$0xff] %vm428_vm1, %v1082_v1  ;;  %s394_s20 = scalar_select %p960_p9, 0, %s959_s16 }
  0x1d   : > { %431 = vst.msk [vmem:[#allocation4 + $0x10] sm:$0xff] %vm428_vm1, %v1082_v1  ;;  %s384_s21 = sadd.s32 %s1146_s30, %s1282_s14  ;;  %p962_p10 = scmp.lt.s32.totalorder %s959_s16, 0 }
  0x1e   : > { %432 = vst.msk [vmem:[#allocation4 + $0x18] sm:$0xff] %vm428_vm1, %v1082_v1  ;;  %s958_s22 = sshll.u32 %s384_s21, 2  ;;  %p968_p11 = scmp.le.s32.totalorder %s1161_s13, 0 }
  0x1f   : > { %s386_s29 = scalar_lea.vmem %s1268_s3, %s958_s22  ;;  %s1284_s20 = smov (!%p962_p10, %s394_s20), 0 }
  0x20   : > { %s400_s6 = sadd.s32 %s1146_s30, %s1284_s20  ;;  %437 = sbr.rel (%p968_p11) target bundleno = 561 (0x231), region = 44 }
  0x21   : > { %s965_s7 = sshll.u32 %s400_s6, 2 }
  0x22   : > { %s1184_s9 = scalar_lea.vmem %s1269_s4, %s965_s7 }
  0x25   : > { %v442_v2 = vld [vmem:[%s386_s29] sm:$0xf]  ;;  %v443_v3 = vld [vmem:[%s386_s29 + $0x4] sm:$0xf]  ;;  %v444_v4 = vld [vmem:[%s386_s29 + $0x8] sm:$0xf] }
  0x26   : > { %v455_v5 = vsel %vm428_vm1, %v442_v2, 0  ;;  %v474_v6 = vsel %vm428_vm1, %v443_v3, 0  ;;  %v493_v7 = vsel %vm428_vm1, %v444_v4, 0  ;;  %v445_v8 = vld [vmem:[%s386_s29 + $0xc] sm:$0xf]  ;;  %v1083_v31 = vmov 0  }
  0x27   : > { %464 = vmatpush.bf16.xpose.msra.mxu0 %v455_v5  ;;  %483 = vmatpush.bf16.xpose.msra.mxu1 %v474_v6  ;;  %v512_v9 = vsel %vm428_vm1, %v445_v8, 0  ;;  %v438_v10 = vld [vmem:[%s1152_s8] sm:$0xf]  ;;  %v439_v11 = vld [vmem:[%s1152_s8 + $0x4] sm:$0xf]  ;;  %v529_v35 = vld [vmem:[#allocation2 + $0x10] sm:$0xff] }
  0x28   : > { %502 = vmatpush.bf16.xpose.msra.mxu2 %v493_v7  ;;  %521 = vmatpush.bf16.xpose.msra.mxu3 %v512_v9  ;;  %v440_v12 = vld [vmem:[%s1152_s8 + $0x8] sm:$0xf]  ;;  %v441_v13 = vld [vmem:[%s1152_s8 + $0xc] sm:$0xf]  ;;  %v1015_v14 = vld [vmem:[%s1174_s19] ss:$0 sm:$0xff] }
  0x29   : > { %1013 = vset.pattern.permute.xlu0 %v1083_v31  ;;  %1012 = vset.pattern.permute.xlu2 %v1083_v31  ;;  %v527_v32 = vld [vmem:[#allocation2] sm:$0xff]  ;;  %v528_v36 = vld [vmem:[#allocation2 + $0x8] sm:$0xff]  ;;  %v530_v43 = vld [vmem:[#allocation2 + $0x18] sm:$0xff]  ;;  %vm651_vm2 = vcmask 1043456  }
  0x2a   : > { %1014 = vset.pattern.permute.xlu1 %v1083_v31  ;;  %v646_v52 = vld [vmem:[%s1184_s9 + $0x8] sm:$0xf]  ;;  %v647_v54 = vld [vmem:[%s1184_s9 + $0xc] sm:$0xf]  ;;  %v644_v56 = vld [vmem:[%s1184_s9] sm:$0xf] }
  0x2b   : > { %v691_v53 = vsel %vm651_vm2, %v646_v52, 0  ;;  %v710_v55 = vsel %vm651_vm2, %v647_v54, 0  ;;  %v645_v57 = vld [vmem:[%s1184_s9 + $0x4] sm:$0xf]  ;;  %v653_v58 = vsel %vm651_vm2, %v644_v56, 0 }
  0x2c   : > { %v672_v59 = vsel %vm651_vm2, %v645_v57, 0 }
  0x2e   : > { %969 = vmatmul.msk.bf16.vlgmr.msra.gmra.mxu0 %vm428_vm1, %v438_v10  ;;  %970 = vmatmul.msk.bf16.vlgmr.msra.gmra.mxu1 %vm428_vm1, %v439_v11 }
  0x2f   : > { %971 = vmatmul.msk.bf16.vlgmr.msra.gmra.mxu2 %vm428_vm1, %v440_v12  ;;  %972 = vmatmul.msk.bf16.vlgmr.msra.gmra.mxu3 %vm428_vm1, %v441_v13 }
  0x30   : > { %700 = vmatpush.bf16.msrb.mxu2 %v691_v53  ;;  %719 = vmatpush.bf16.msrb.mxu3 %v710_v55 }
  0x31   : > { %662 = vmatpush.bf16.msrb.mxu0 %v653_v58  ;;  %681 = vmatpush.bf16.msrb.mxu1 %v672_v59 }
  0xab   : > { %v466_v15 = vpop.f32.mrf.mxu0  ;;  %v485_v16 = vpop.f32.mrf.mxu1 }
  0xac   : > { %v1200_v17 = vadd.f32 %v1015_v14, %v466_v15  ;;  %v1204_v19 = vadd.f32 %v1015_v14, %v485_v16 }
  0xae   : > { %v531_v18 = vsel %vm428_vm1, %v1200_v17, -inf  ;;  %v534_v24 = vsel %vm428_vm1, %v1204_v19, -inf }
  0xaf   : > { %532 = vmax.xlane.f32.xlu1 %v531_v18 }
  0xb2   : > { %v504_v20 = vpop.f32.mrf.mxu2  ;;  %v523_v25 = vpop.f32.mrf.mxu3 }
  0xb3   : > { %v1206_v21 = vadd.f32 %v1015_v14, %v504_v20  ;;  %v468_v22 = vpop.f32.mrf.mxu0  ;;  %v487_v23 = vpop.f32.mrf.mxu1  ;;  %v1212_v27 = vadd.f32 %v1015_v14, %v523_v25  ;;  %v585_v20 = vld [vmem:[#allocation3 + $0x10] sm:$0xff] }
  0xb5   : > { %v537_v26 = vsel %vm428_vm1, %v1206_v21, -inf  ;;  %v540_v29 = vsel %vm428_vm1, %v1212_v27, -inf }
  0xb6   : > { %538 = vmax.xlane.f32.xlu0 %v537_v26 }
  0xb7   : > { %535 = vmax.xlane.f32.xlu1 %v534_v24  ;;  %v586_v24 = vld [vmem:[#allocation3 + $0x18] sm:$0xff] }
  0xba   : > { %v506_v28 = vpop.f32.mrf.mxu2  ;;  %v525_v30 = vpop.f32.mrf.mxu3 }
  0xbb   : > { %v614_v28 = vld [vmem:[#allocation4 + $0x10] sm:$0xff] }
  0xbe   : > { %541 = vmax.xlane.f32.xlu0 %v540_v29  ;;  %v583_v29 = vld [vmem:[#allocation3] sm:$0xff] }
 0x122   : > { %v533_v33 = vpop.xlane.xlu1 %532 }
 0x123   : > { %v543_v34 = vmax.f32 %v527_v32, %v533_v33 }
 0x125   : > { %733 = vst.msk [vmem:[#allocation2] sm:$0xff] %vm419_vm0, %v543_v34  ;;  %557 = vperm.xlu0 %1013, %v543_v34   ;;  %v547_v37 = vsub.f32 %v527_v32, %v543_v34 }
 0x127   : > { %1016 = vpow2.f32 %v547_v37  ;;  %v584_v37 = vld [vmem:[#allocation3 + $0x8] sm:$0xff] }
 0x129   : > { %v539_v38 = vpop.xlane.xlu0 %538 }
 0x12a   : > { %v545_v39 = vmax.f32 %v529_v35, %v539_v38  ;;  %v536_v40 = vpop.xlane.xlu1 %535  ;;  %v612_v38 = vld [vmem:[#allocation4] sm:$0xff] }
 0x12b   : > { %v544_v41 = vmax.f32 %v528_v36, %v536_v40 }
 0x12c   : > { %v549_v42 = vsub.f32 %v529_v35, %v545_v39  ;;  %735 = vst.msk [vmem:[#allocation2 + $0x10] sm:$0xff] %vm419_vm0, %v545_v39  ;;  %567 = vperm.xlu2 %1012, %v545_v39  }
 0x12d   : > { %734 = vst.msk [vmem:[#allocation2 + $0x8] sm:$0xff] %vm419_vm0, %v544_v41  ;;  %562 = vperm.xlu1 %1014, %v544_v41   ;;  %v548_v45 = vsub.f32 %v528_v36, %v544_v41  ;;  %v1219_v47 = vpop.eup %1016  ;;  %v615_v36 = vld [vmem:[#allocation4 + $0x18] sm:$0xff] }
 0x12e   : > { %1018 = vpow2.f32 %v549_v42  ;;  %v587_v31 = vmul.f32 %v1219_v47, %v583_v29 }
 0x12f   : > { %1020 = vpow2.f32 %v548_v45 }
 0x131   : > { %v542_v44 = vpop.xlane.xlu0 %541 }
 0x132   : > { %v546_v46 = vmax.f32 %v530_v43, %v542_v44 }
 0x134   : > { %v1019_v48 = vpop.eup %1018  ;;  %736 = vst.msk [vmem:[#allocation2 + $0x18] sm:$0xff] %vm419_vm0, %v546_v46  ;;  %572 = vperm.xlu2 %1012, %v546_v46   ;;  %v550_v49 = vsub.f32 %v530_v43, %v546_v46 }
 0x135   : > { %628 = vperm.xlu0 %1013, %v1019_v48   ;;  %618 = vperm.xlu1 %1014, %v1219_v47   ;;  %v1223_v50 = vpop.eup %1020 }
 0x136   : > { %1022 = vpow2.f32 %v550_v49  ;;  %v588_v42 = vmul.f32 %v1223_v50, %v584_v37  ;;  %v613_v49 = vld [vmem:[#allocation4 + $0x8] sm:$0xff] }
 0x13c   : > { %v1023_v51 = vpop.eup %1022 }
 0x13d   : > { %623 = vperm.xlu1 %1014, %v1223_v50   ;;  %v590_v25 = vmul.f32 %v1023_v51, %v586_v24 }
 0x145   : > { %633 = vperm.xlu1 %1014, %v1023_v51  }
 0x186   : > { %v568_v60 = vpop.permute.xlu2 %567 }
 0x187   : > { %v577_v61 = vsub.f32 %v1206_v21, %v568_v60  ;;  %v589_v21 = vmul.f32 %v1019_v48, %v585_v20 }
 0x189   : > { %1024 = vpow2.f32 %v577_v61 }
 0x18e   : > { %v573_v62 = vpop.permute.xlu2 %572 }
 0x18f   : > { %v1025_v63 = vpop.eup %1024  ;;  %v578_v0 = vsub.f32 %v1212_v27, %v573_v62 }
 0x190   : > { %v597_v1 = vsel %vm428_vm1, %v1025_v63, 0.0  ;;  %v642_v2 = vpack.c.bf16 %v1025_v63, %v1025_v63 }
 0x191   : > { %1026 = vpow2.f32 %v578_v0  ;;  %598 = vadd.xlane.f32.xlu0 %v597_v1 }
 0x192   : > { %975 = vmatmul.msk.bf16.vlgmr.msrb.gmra.mxu2 %vm428_vm1, %v642_v2 }
 0x197   : > { %v1027_v3 = vpop.eup %1026  ;;  %v558_v4 = vpop.permute.xlu0 %557 }
 0x198   : > { %v575_v5 = vsub.f32 %v1200_v17, %v558_v4  ;;  %v600_v6 = vsel %vm428_vm1, %v1027_v3, 0.0  ;;  %v643_v7 = vpack.c.bf16 %v1027_v3, %v1027_v3 }
 0x199   : > { %601 = vadd.xlane.f32.xlu1 %v600_v6 }
 0x19a   : > { %1028 = vpow2.f32 %v575_v5  ;;  %976 = vmatmul.msk.bf16.vlgmr.msrb.gmra.mxu3 %vm428_vm1, %v643_v7 }
 0x19f   : > { %v563_v8 = vpop.permute.xlu1 %562 }
 0x1a0   : > { %v1029_v9 = vpop.eup %1028  ;;  %v576_v10 = vsub.f32 %v1204_v19, %v563_v8 }
 0x1a1   : > { %v591_v11 = vsel %vm428_vm1, %v1029_v9, 0.0  ;;  %v640_v12 = vpack.c.bf16 %v1029_v9, %v1029_v9 }
 0x1a2   : > { %1030 = vpow2.f32 %v576_v10  ;;  %592 = vadd.xlane.f32.xlu2 %v591_v11 }
 0x1a3   : > { %973 = vmatmul.msk.bf16.vlgmr.msrb.gmra.mxu0 %vm428_vm1, %v640_v12 }
 0x1a7   : > { %v619_v16 = vpop.permute.xlu1 %618  ;;  %v629_v18 = vpop.permute.xlu0 %628 }
 0x1a8   : > { %v1031_v13 = vpop.eup %1030  ;;  %v638_v30 = vmul.f32 %v629_v18, %v614_v28  ;;  %v636_v45 = vmul.f32 %v619_v16, %v612_v38 }
 0x1a9   : > { %v594_v14 = vsel %vm428_vm1, %v1031_v13, 0.0  ;;  %v641_v15 = vpack.c.bf16 %v1031_v13, %v1031_v13 }
 0x1aa   : > { %595 = vadd.xlane.f32.xlu2 %v594_v14 }
 0x1ab   : > { %974 = vmatmul.msk.bf16.vlgmr.msrb.gmra.mxu1 %vm428_vm1, %v641_v15 }
 0x1af   : > { %v624_v17 = vpop.permute.xlu1 %623 }
 0x1b0   : > { %v637_v52 = vmul.f32 %v624_v17, %v613_v49 }
 0x1b7   : > { %v634_v19 = vpop.permute.xlu1 %633 }
 0x1b8   : > { %v639_v39 = vmul.f32 %v634_v19, %v615_v36 }
 0x204   : > { %v599_v22 = vpop.xlane.xlu0 %598 }
 0x205   : > { %v605_v23 = vadd.f32 %v599_v22, %v589_v21 }
 0x207   : > { %610 = vst.msk [vmem:[#allocation3 + $0x10] sm:$0xff] %vm419_vm0, %v605_v23 }
 0x20c   : > { %v602_v26 = vpop.xlane.xlu1 %601 }
 0x20d   : > { %v606_v27 = vadd.f32 %v602_v26, %v590_v25 }
 0x20f   : > { %611 = vst.msk [vmem:[#allocation3 + $0x18] sm:$0xff] %vm419_vm0, %v606_v27 }
 0x215   : > { %v702_v32 = vpop.f32.mrf.mxu2  ;;  %v593_v33 = vpop.xlane.xlu2 %592 }
 0x216   : > { %v727_v34 = vadd.f32 %v702_v32, %v638_v30  ;;  %v603_v35 = vadd.f32 %v593_v33, %v587_v31 }
 0x218   : > { %731 = vst.msk [vmem:[#allocation4 + $0x10] sm:$0xff] %vm428_vm1, %v727_v34 }
 0x219   : > { %608 = vst.msk [vmem:[#allocation3] sm:$0xff] %vm419_vm0, %v603_v35 }
 0x21d   : > { %v704_v40 = vpop.f32.mrf.mxu2  ;;  %v721_v41 = vpop.f32.mrf.mxu3 }
 0x21e   : > { %v728_v43 = vadd.f32 %v721_v41, %v639_v39  ;;  %v596_v44 = vpop.xlane.xlu2 %595 }
 0x21f   : > { %v604_v46 = vadd.f32 %v596_v44, %v588_v42 }
 0x220   : > { %732 = vst.msk [vmem:[#allocation4 + $0x18] sm:$0xff] %vm428_vm1, %v728_v43  ;;  %v664_v47 = vpop.f32.mrf.mxu0 }
 0x221   : > { %609 = vst.msk [vmem:[#allocation3 + $0x8] sm:$0xff] %vm419_vm0, %v604_v46  ;;  %v725_v48 = vadd.f32 %v664_v47, %v636_v45 }
 0x223   : > { %729 = vst.msk [vmem:[#allocation4] sm:$0xff] %vm428_vm1, %v725_v48 }
 0x225   : > { %v723_v51 = vpop.f32.mrf.mxu3 }
 0x228   : > { %v666_v53 = vpop.f32.mrf.mxu0  ;;  %v683_v54 = vpop.f32.mrf.mxu1 }
 0x229   : > { %v726_v55 = vadd.f32 %v683_v54, %v637_v52 }
 0x22b   : > { %730 = vst.msk [vmem:[#allocation4 + $0x8] sm:$0xff] %vm428_vm1, %v726_v55 }
 0x230   : > { %v685_v50 = vpop.f32.mrf.mxu1 }
 0x231 PF: > { %v747_v56 = vld [vmem:[#allocation3 + $0x18] sm:$0xff]  ;;  %v745_v57 = vld [vmem:[#allocation3 + $0x8] sm:$0xff]  ;;  %v1084_v58 = vmov 0   ;;  %v744_v59 = vld [vmem:[#allocation3] sm:$0xff]  ;;  %s1085_s30 = smov 24   ;;  %s1086_s8 = smov 8  }
 0x232   : > { %1033 = vset.pattern.permute.xlu1 %v1084_v58  ;;  %1034 = vrcp.f32 %v747_v56  ;;  %1032 = vset.pattern.permute.xlu0 %v1084_v58  ;;  %v746_v60 = vld [vmem:[#allocation3 + $0x10] sm:$0xff]  ;;  %v743_v1 = vld [vmem:[#allocation4 + $0x18] sm:$0xff]  ;;  %v741_v2 = vld [vmem:[#allocation4 + $0x8] sm:$0xff]  ;;  %vm777_vm3 = vcmask 60416   ;;  %s1087_s10 = smov 16   ;;  %vm784_vm4 = vcmask 126016  }
 0x233   : > { %1036 = vrcp.f32 %v745_v57  ;;  %v740_v9 = vld [vmem:[#allocation4] sm:$0xff]  ;;  %v742_v10 = vld [vmem:[#allocation4 + $0x10] sm:$0xff]  ;;  %vm791_vm5 = vcmask 191616   ;;  %vm798_vm6 = vcmask 257216  }
 0x234   : > { %1038 = vrcp.f32 %v744_v59 }
 0x235   : > { %1040 = vrcp.f32 %v746_v60 }
 0x238   : > { %v1035_v61 = vpop.eup %1034 }
 0x239   : > { %v1037_v62 = vpop.eup %1036  ;;  %769 = vperm.xlu1 %1033, %v1035_v61  }
 0x23a   : > { %759 = vperm.xlu0 %1032, %v1037_v62   ;;  %v1039_v63 = vpop.eup %1038 }
 0x23b   : > { %v1041_v0 = vpop.eup %1040 }
 0x241   : > { %754 = vperm.xlu1 %1033, %v1039_v63  }
 0x242   : > { %764 = vperm.xlu0 %1032, %v1041_v0  }
 0x2ab   : > { %v770_v3 = vpop.permute.xlu1 %769 }
 0x2ac   : > { %v775_v4 = vmul.f32 %v770_v3, %v743_v1  ;;  %v760_v5 = vpop.permute.xlu0 %759 }
 0x2ad   : > { %v773_v6 = vmul.f32 %v760_v5, %v741_v2 }
 0x2ae   : > { %v793_v7 = vpack.c.bf16 %v775_v4, %v775_v4 }
 0x2af   : > { %v779_v8 = vpack.c.bf16 %v773_v6, %v773_v6 }
 0x2b0   : > { %795 = vrot.lane.b32.xlu0 %v793_v7, %s1085_s30 }
 0x2b1   : > { %781 = vrot.lane.b32.xlu2 %v779_v8, %s1086_s8 }
 0x2b3   : > { %v755_v11 = vpop.permute.xlu1 %754 }
 0x2b4   : > { %v772_v12 = vmul.f32 %v755_v11, %v740_v9  ;;  %v765_v13 = vpop.permute.xlu0 %764 }
 0x2b5   : > { %v774_v14 = vmul.f32 %v765_v13, %v742_v10 }
 0x2b6   : > { %v776_v15 = vpack.c.bf16 %v772_v12, %v772_v12 }
 0x2b7   : > { %v786_v16 = vpack.c.bf16 %v774_v14, %v774_v14 }
 0x2b8   : > { %778 = vst.msk [vmem:[%s1158_s11] sm:$0xf] %vm777_vm3, %v776_v15 }
 0x2b9   : > { %788 = vrot.lane.b32.xlu2 %v786_v16, %s1087_s10 }
 0x30b   : > { %v782_v17 = vpop.permute.xlu2 %781 }
 0x30c   : > { %785 = vst.msk [vmem:[%s1158_s11] sm:$0xf] %vm784_vm4, %v782_v17 }
 0x313   : > { %v789_v18 = vpop.permute.xlu2 %788 }
 0x314   : > { %792 = vst.msk [vmem:[%s1158_s11] sm:$0xf] %vm791_vm5, %v789_v18 }
 0x322   : > { %v796_v20 = vpop.permute.xlu0 %795 }
 0x323   : > { %799 = vst.msk [vmem:[%s1158_s11] sm:$0xf] %vm798_vm6, %v796_v20 }
 0x324 PF: > { %s23_s24 = sadd.s32 1, %s1078_s24   ;;  %s1271_s22 = smov %s1074_s23 }
 0x325   : > { %p20_p12 = scmp.ge.s32.totalorder %s23_s24, 4   ;;  %s1272_s23 = smov %s1274_s0 }
 0x327   :  { %22 = sbr.rel (!%p20_p12) target bundleno = 8 (0x8), region = 87 }

// kernel: transformer_encoder_forward.11
= control target key start
LH: loop header
LB: loop body
LE: loop exit
PB: predicated region body
PF: predicated region fallthrough
CT: control target
= control target key end

     0   :  { %s1082_s21 = smov 0   ;;  %s1084_s22 = smov 0   ;;  %s1183_s0 = inlined_call_operand.vmem [shape: bf16[2,8,32], index: 0, kind: input, shape index: {}]   ;;  %s1184_s1 = inlined_call_operand.vmem [shape: bf16[2,8,32], index: 1, kind: input, shape index: {}]   ;;  %s1185_s2 = inlined_call_operand.vmem [shape: bf16[32,32], index: 2, kind: input, shape index: {}]   ;;  %s1186_s3 = inlined_call_operand.vmem [shape: f32[1,32], index: 3, kind: input, shape index: {}]   ;;  %s1187_s4 = inlined_call_operand.vmem [shape: f32[1,32], index: 4, kind: input, shape index: {}]   ;;  %s1188_s5 = inlined_call_operand.vmem [shape: f32[1,32], index: 5, kind: input, shape index: {}]   ;;  %s1189_s6 = inlined_call_operand.vmem [shape: bf16[32,64], index: 6, kind: input, shape index: {}]   ;;  %s1190_s7 = inlined_call_operand.vmem [shape: f32[1,64], index: 7, kind: input, shape index: {}]   ;;  %s1191_s8 = inlined_call_operand.vmem [shape: bf16[64,32], index: 8, kind: input, shape index: {}]   ;;  %s1192_s9 = inlined_call_operand.vmem [shape: f32[1,32], index: 9, kind: input, shape index: {}]   ;;  %s1193_s10 = inlined_call_operand.vmem [shape: f32[1,32], index: 10, kind: input, shape index: {}]   ;;  %s1194_s11 = inlined_call_operand.vmem [shape: f32[1,32], index: 11, kind: input, shape index: {}]   ;;  %s1195_s12 = inlined_call_operand.vmem [shape: f32[2,8,32], index: 12, kind: output, shape index: {}]  }
   0x1   :  { %s1086_s23 = smov 0  }
   0x2 LB: > { %s41_s24 = sadd.s32 1, %s1009_s22  ;;  %p903_p0 = scmp.ge.s32.totalorder %s1013_s23, 1  ;;  %s1013_s23 = sphi %s1086_s23, %s22_s23   ;;  %s1009_s22 = sphi %s1084_s22, %s1197_s22   ;;  %s1005_s21 = sphi %s1082_s21, %s1196_s21  }
   0x3   : > { %p43_p1 = scmp.ge.s32.totalorder %s41_s24, 2  ;;  %p429_p2 = scmp.lt.s32.totalorder %s1013_s23, 3 }
   0x5   : > { %s1199_s24 = smov (%p43_p1, %s41_s24), 0  ;;  %p430_p3 = pnand %p903_p0, %p429_p2 }
   0x6   : > { %p494_p4 = scmp.lt.s32.totalorder (!%p430_p3), %s1005_s21, 1 }
   0x7   : > { %433 = sbr.rel (%p430_p3) target bundleno = 975 (0x3cf), region = 68 }
   0xc   : > { %v945_v0 = vld [vmem:[%s1185_s2 + $0x8] sm:$0xff]  ;;  %v944_v1 = vld [vmem:[%s1185_s2] sm:$0xff]  ;;  %s1201_s21 = smov (!%p494_p4, %s1005_s21), 1  ;;  %vm554_vm0 = vcmask 261120   ;;  %v1015_v11 = vmov 32.0   ;;  %v951_v28 = vld [vmem:[%s1191_s8 + $0x18] sm:$0xff] }
   0xd   : > { %564 = vmatpush.bf16.msra.mxu0 %v945_v0  ;;  %s904_s29 = sshll.u32 %s1201_s21, 2  ;;  %v978_v4 = vld [vmem:[%s1186_s3] ss:$0 sm:$0xff]  ;;  %985 = vrcp.f32 %v1015_v11  ;;  %v947_v23 = vld [vmem:[%s1189_s6 + $0x8] sm:$0xff]  ;;  %699 = vmatpush.bf16.msra.mxu2 %v951_v28  ;;  %v950_v29 = vld [vmem:[%s1191_s8 + $0x10] sm:$0xff]  ;;  %vm615_vm5 = vcmask 257024  }
   0xe   : > { %s500_s14 = scalar_lea.vmem %s1183_s0, %s904_s29  ;;  %s507_s17 = scalar_lea.vmem %s1184_s1, %s904_s29  ;;  %649 = vmatpush.bf16.msra.mxu1 %v947_v23  ;;  %v946_v25 = vld [vmem:[%s1189_s6] sm:$0xff]  ;;  %v949_v44 = vld [vmem:[%s1191_s8 + $0x8] sm:$0xff]  ;;  %v1016_v46 = vmov 0.0   ;;  %vm691_vm6 = vcmask 523264  }
   0xf   : > { %v533_v2 = vld [vmem:[%s500_s14] sm:$0xf]  ;;  %617 = vst.msk [vmem:[#allocation4] sm:$0xff] %vm554_vm0, %v1016_v46  ;;  %s906_s14 = sshll.u32 %s1201_s21, 3 }
  0x10   : > { %v571_v3 = vld [vmem:[%s507_s17] sm:$0xf]  ;;  %s527_s19 = scalar_lea.vmem %s1195_s12, %s906_s14 }
  0x11   : > { %565 = vmatpush.bf16.msra.mxu0 %v944_v1  ;;  %v572_v5 = vunpack.c.l.bf16 %v571_v3  ;;  %700 = vmatpush.bf16.msra.mxu2 %v950_v29  ;;  %v979_v36 = vld [vmem:[%s1187_s4] ss:$0 sm:$0xff] }
  0x12   : > { %650 = vmatpush.bf16.msra.mxu1 %v946_v25  ;;  %v980_v38 = vld [vmem:[%s1188_s5] ss:$0 sm:$0xff] }
  0x13   : > { %v986_v12 = vpop.eup %985  ;;  %v948_v45 = vld [vmem:[%s1191_s8] sm:$0xff] }
  0x14   : > { %915 = vmatmul.msk.bf16.vlgmr.msra.gmra.mxu0 %vm554_vm0, %v533_v2  ;;  %v581_v13 = vmul.f32 32.0, %v986_v12  ;;  %vm585_vm1 = vweird.f32 %v986_v12  ;;  %v981_v47 = vld [vmem:[%s1190_s7] ss:$0 sm:$0xff] }
  0x15   : > { %701 = vmatpush.bf16.msra.mxu2 %v949_v44  ;;  %v982_v56 = vld [vmem:[%s1192_s9] ss:$0 sm:$0xff] }
  0x16   : > { %v582_v14 = vsub.f32 1.0, %v581_v13  ;;  %v657_v53 = vld [vmem:[#allocation4] sm:$0xff]  ;;  %v983_v13 = vld [vmem:[%s1193_s10] ss:$0 sm:$0xff] }
  0x18   : > { %v583_v15 = vmul.f32 %v986_v12, %v582_v14 }
  0x19   : > { %702 = vmatpush.bf16.msra.mxu2 %v948_v45 }
  0x1a   : > { %v584_v16 = vadd.f32 %v986_v12, %v583_v15  ;;  %v984_v15 = vld [vmem:[%s1194_s11] ss:$0 sm:$0xff] }
  0x1c   : > { %v1121_v17 = vsel %vm585_vm1, %v986_v12, %v584_v16 }
  0x91   : > { %v567_v6 = vpop.f32.mrf.mxu0 }
  0x92   : > { %v568_v7 = vadd.f32 %v978_v4, %v567_v6 }
  0x94   : > { %v573_v8 = vadd.f32 %v572_v5, %v568_v7 }
  0x96   : > { %574 = vst.msk [vmem:[#allocation2] sm:$0xff] %vm554_vm0, %v573_v8  ;;  %v577_v9 = vsel %vm554_vm0, %v573_v8, 0.0 }
  0x97   : > { %578 = vadd.xlane.f32.xlu0 %v577_v9 }
  0x99   : > { %v569_v10 = vpop.f32.mrf.mxu0 }
  0x9d   : > { %v719_v60 = vld [vmem:[#allocation2] sm:$0xff] }
 0x10a   : > { %v579_v18 = vpop.xlane.xlu0 %578 }
 0x10b   : > { %v587_v19 = vmul.f32 %v1121_v17, %v579_v18 }
 0x10d   : > { %v588_v20 = vsub.f32 %v573_v8, %v587_v19 }
 0x10f   : > { %v589_v21 = vmul.f32 %v588_v20, %v588_v20 }
 0x111   : > { %v590_v22 = vsel %vm554_vm0, %v589_v21, 0.0 }
 0x112   : > { %591 = vadd.xlane.f32.xlu0 %v590_v22 }
 0x185   : > { %v592_v24 = vpop.xlane.xlu0 %591 }
 0x186   : > { %v593_v26 = vmul.f32 %v592_v24, %v1121_v17 }
 0x188   : > { %v594_v27 = vadd.f32 1e-06, %v593_v26 }
 0x18a   : > { %987 = vrsqrt.f32 %v594_v27  ;;  %vm601_vm3 = vweird.f32 %v594_v27 }
 0x190   : > { %v988_v30 = vpop.eup %987 }
 0x191   : > { %v596_v31 = vmul.f32 %v988_v30, %v594_v27  ;;  %vm602_vm2 = vweird.f32 %v988_v30 }
 0x192   : > { %vm603_vm4 = vmor %vm601_vm3, %vm602_vm2 }
 0x193   : > { %v597_v32 = vmul.f32 %v988_v30, %v596_v31 }
 0x195   : > { %v598_v33 = vmul.f32 0.5, %v597_v32 }
 0x197   : > { %v599_v34 = vsub.f32 1.5, %v598_v33 }
 0x199   : > { %v600_v35 = vmul.f32 %v988_v30, %v599_v34 }
 0x19b   : > { %v604_v37 = vsel %vm603_vm4, %v988_v30, %v600_v35 }
 0x19c   : > { %v605_v39 = vmul.f32 %v604_v37, %v588_v20 }
 0x19e   : > { %v609_v40 = vmul.f32 %v979_v36, %v605_v39 }
 0x1a0   : > { %v613_v41 = vadd.f32 %v980_v38, %v609_v40 }
 0x1a2   : > { %v614_v42 = vpack.c.bf16 %v613_v41, %v613_v41 }
 0x1a4   : > { %616 = vst.msk [vmem:[#allocation3] sm:$0xf] %vm615_vm5, %v614_v42 }
 0x1ab   : > { %v618_v43 = vld [vmem:[#allocation3] sm:$0xf] }
 0x1ac   : > { %924 = vmatmul.msk.bf16.vlgmr.msra.gmra.mxu1 %vm554_vm0, %v618_v43 }
 0x229   : > { %v652_v48 = vpop.f32.mrf.mxu1 }
 0x22a   : > { %v653_v49 = vadd.f32 %v981_v47, %v652_v48 }
 0x22c   : > { %v656_v50 = vmax.f32 %v653_v49, 0.0 }
 0x22e   : > { %v658_v51 = vpack.c.bf16 %v656_v50, %v656_v50 }
 0x230   : > { %941 = vmatmul.msk.bf16.vlgmr.msra.gmra.mxu2 %vm691_vm6, %v658_v51 }
 0x231   : > { %v654_v52 = vpop.f32.mrf.mxu1 }
 0x2b3   : > { %v704_v54 = vpop.f32.mrf.mxu2 }
 0x2b4   : > { %v708_v55 = vadd.f32 %v704_v54, %v657_v53 }
 0x2b6   : > { %709 = vst.msk [vmem:[#allocation4] sm:$0xff] %vm554_vm0, %v708_v55 }
 0x2bb   : > { %v706_v57 = vpop.f32.mrf.mxu2 }
 0x2bd   : > { %v713_v58 = vld [vmem:[#allocation4] sm:$0xff] }
 0x2be   : > { %v718_v59 = vadd.f32 %v982_v56, %v713_v58 }
 0x2c0   : > { %v720_v61 = vadd.f32 %v719_v60, %v718_v59 }
 0x2c2   : > { %v723_v62 = vsel %vm554_vm0, %v720_v61, 0.0 }
 0x2c3   : > { %724 = vadd.xlane.f32.xlu1 %v723_v62 }
 0x336   : > { %v725_v63 = vpop.xlane.xlu1 %724 }
 0x337   : > { %v733_v0 = vmul.f32 %v725_v63, %v1121_v17 }
 0x339   : > { %v734_v1 = vsub.f32 %v720_v61, %v733_v0 }
 0x33b   : > { %v735_v2 = vmul.f32 %v734_v1, %v734_v1 }
 0x33d   : > { %v736_v3 = vsel %vm554_vm0, %v735_v2, 0.0 }
 0x33e   : > { %737 = vadd.xlane.f32.xlu1 %v736_v3 }
 0x3b1   : > { %v738_v4 = vpop.xlane.xlu1 %737 }
 0x3b2   : > { %v739_v5 = vmul.f32 %v738_v4, %v1121_v17 }
 0x3b4   : > { %v740_v6 = vadd.f32 1e-06, %v739_v5 }
 0x3b6   : > { %989 = vrsqrt.f32 %v740_v6  ;;  %vm747_vm8 = vweird.f32 %v740_v6 }
 0x3bc   : > { %v990_v7 = vpop.eup %989 }
 0x3bd   : > { %v742_v8 = vmul.f32 %v990_v7, %v740_v6  ;;  %vm748_vm7 = vweird.f32 %v990_v7 }
 0x3be   : > { %vm749_vm9 = vmor %vm747_vm8, %vm748_vm7 }
 0x3bf   : > { %v743_v9 = vmul.f32 %v990_v7, %v742_v8 }
 0x3c1   : > { %v744_v10 = vmul.f32 0.5, %v743_v9 }
 0x3c3   : > { %v745_v11 = vsub.f32 1.5, %v744_v10 }
 0x3c5   : > { %v746_v12 = vmul.f32 %v990_v7, %v745_v11 }
 0x3c7   : > { %v750_v14 = vsel %vm749_vm9, %v990_v7, %v746_v12 }
 0x3c8   : > { %v751_v16 = vmul.f32 %v750_v14, %v734_v1 }
 0x3ca   : > { %v755_v17 = vmul.f32 %v983_v13, %v751_v16 }
 0x3cc   : > { %v759_v18 = vadd.f32 %v984_v15, %v755_v17 }
 0x3ce   : > { %760 = vst.msk [vmem:[%s527_s19] sm:$0xff] %vm554_vm0, %v759_v18 }
 0x3cf PF: > { %s22_s23 = sadd.s32 1, %s1013_s23   ;;  %s1196_s21 = smov %s1009_s22 }
 0x3d0   : > { %p19_p5 = scmp.ge.s32.totalorder %s22_s23, 4   ;;  %s1197_s22 = smov %s1199_s24 }
 0x3d2   :  { %21 = sbr.rel (!%p19_p5) target bundleno = 2 (0x2), region = 118 }

</bundles_post_ra>
